<compile_context>
chip_gen: v6e
topology: v6e:2x2x1
jax: 0.10.0
libtpu: 0.0.40
codegen_flags: <defaults>
</compile_context>

<pallas_src>
import jax
import jax.numpy as jnp
from jax.experimental import pallas as pl
from jax.experimental.pallas import tpu as pltpu


# ----------------------------- helpers ------------------------------------ #

def _round_up(x, m):
    return -(-x // m) * m


def _vmem_capacity_bytes():
    try:
        return int(pltpu.get_tpu_info().vmem_capacity_bytes)
    except Exception:
        return 64 * 1024 * 1024          # conservative (v7x-sized) fallback


def _num_tensorcores():
    try:
        kind = jax.devices()[0].device_kind.lower()
        return 2 if "v7" in kind else 1  # v7x: 2 TensorCores per chip
    except Exception:
        return 1


def _tile_bytes(BB, C, HWp, in_itemsize, opad):
    """Per-grid-step VMEM footprint (conservative)."""
    rows = BB * HWp
    streams = 2 * 2 * rows * C * in_itemsize     # 2 inputs, double-buffered by the pipeline
    interm = 3 * rows * C * 4                    # z, x, prod live in f32
    consts = 2 * (C * C * in_itemsize + C * opad * 4 + opad * 4)  # double-buffered constants
    small = BB * C * 4 + 3 * BB * opad * 4       # corr + score + double-buffered output block
    return streams + interm + consts + small


def _pick_batch_tile(B, C, HWp, in_itemsize, opad, budget, num_cores):
    """Largest multiple-of-8 batch tile whose full footprint fits the budget."""
    B8 = _round_up(B, 8)
    slope = HWp * C * (2 * 2 * in_itemsize + 3 * 4) + C * 4 + 3 * opad * 4
    const = 2 * (C * C * in_itemsize + C * opad * 4 + opad * 4)
    if budget > const + 8 * slope:
        fit = max(8, ((budget - const) // slope) // 8 * 8)
    else:
        fit = 8                                   # can't go below the minimum tile
    bb = min(B8, fit)
    # v7x: make sure the "parallel" grid axis has >= 2 tiles so both TCs get work.
    if num_cores >= 2 and B8 >= 16:
        bb = min(bb, max(8, (B8 // 2) // 8 * 8))
    return bb


# ------------------------------ kernel ------------------------------------- #

def _make_kernel(BB, HWp, C):
    def kernel(t_ref, b_ref, wct_ref, wfc_ref, bias_ref, o_ref):
        # t_ref, b_ref : (BB*HWp, C)  compute dtype (bf16), channels-last rows (b, hw)
        # wct_ref      : (C, C)       compute dtype (conv weight transposed)
        # wfc_ref      : (C, 128)     f32 fc weight (zero-padded past column 1)
        # bias_ref     : (1, 128)     f32 fc bias   (zero-padded)
        # o_ref        : (BB, 128)    f32 scores for this batch tile
        wct = wct_ref[...]

        # Shared 1x1 conv for both streams: one MXU matmul each, f32 accumulate.
        z = jnp.dot(t_ref[...], wct, preferred_element_type=jnp.float32)   # (BB*HWp, C)
        x = jnp.dot(b_ref[...], wct, preferred_element_type=jnp.float32)   # (BB*HWp, C)
        prod = z * x                                                        # VPU, f32

        # Depthwise xcorr at equal spatial size == per-(b,c) sum over HW.
        # HWp % 8 == 0, so this reshape is a pure retiling (no lane/sublane
        # shuffles) and the reduction is a cheap cross-sublane sum.
        corr = jnp.sum(prod.reshape(BB, HWp, C), axis=1)                    # (BB, C)
        corr = jnp.maximum(corr, 0.0)                                       # relu

        # fc on the padded weight -> one lane-dense (BB, 128) slab per tile.
        score = jnp.dot(corr, wfc_ref[...], preferred_element_type=jnp.float32)
        o_ref[...] = score + bias_ref[...]
    return kernel


# ----------------------------- wrapper ------------------------------------- #

def local_detector_forward(target_feat, box_feat, conv_w, fc_w, fc_b,
                           *, compute_dtype=jnp.bfloat16):
    """target_feat/box_feat: (B, C, H, W) f32 (NCHW, same as PyTorch).
       conv_w: (C, C) (the (C,C,1,1) conv kernel squeezed), fc_w: (2, C), fc_b: (2,).
       Returns (B, 2) f32 scores."""
    B, C, H, W = target_feat.shape
    HW = H * W
    HWp = _round_up(HW, 8)        # sublane alignment; keeps the in-kernel reshape a pure retiling
    OPAD = 128                    # fc output padded to a full lane set
    in_item = jnp.dtype(compute_dtype).itemsize

    vmem_cap = _vmem_capacity_bytes()
    budget = int(vmem_cap * 0.55)
    BB = _pick_batch_tile(B, C, HWp, in_item, OPAD, budget, _num_tensorcores())
    n_tiles = -(-B // BB)
    B_pad = n_tiles * BB

    def relayout(feat):
        f = feat.astype(compute_dtype)                   # cast BEFORE transpose (half the HBM bytes)
        f = f.reshape(B, C, HW).transpose(0, 2, 1)       # (B, HW, C) channels-last
        f = jnp.pad(f, ((0, B_pad - B), (0, HWp - HW), (0, 0)))
        return f.reshape(B_pad * HWp, C)

    t_flat = relayout(target_feat)
    b_flat = relayout(box_feat)
    wc_t = conv_w.T.astype(compute_dtype)                # (C, C): z = feat @ conv_w.T

    wfc_pad = jnp.zeros((C, OPAD), jnp.float32).at[:, :2].set(fc_w.T.astype(jnp.float32))
    bias_pad = jnp.zeros((1, OPAD), jnp.float32).at[0, :2].set(fc_b.astype(jnp.float32))

    tile_bytes = _tile_bytes(BB, C, HWp, in_item, OPAD)
    vmem_limit = int(min(vmem_cap * 0.92, max(32 << 20, tile_bytes + (8 << 20))))

    out = pl.pallas_call(
        _make_kernel(BB, HWp, C),
        out_shape=jax.ShapeDtypeStruct((B_pad, OPAD), jnp.float32),
        grid_spec=pltpu.PrefetchScalarGridSpec(
            num_scalar_prefetch=0,
            grid=(n_tiles,),
            in_specs=[
                pl.BlockSpec((BB * HWp, C), lambda i: (i, 0)),   # target slab
                pl.BlockSpec((BB * HWp, C), lambda i: (i, 0)),   # box slab
                pl.BlockSpec((C, C), lambda i: (0, 0)),          # conv weight^T (grid-invariant)
                pl.BlockSpec((C, OPAD), lambda i: (0, 0)),       # fc weight (padded)
                pl.BlockSpec((1, OPAD), lambda i: (0, 0)),       # fc bias (padded)
            ],
            out_specs=pl.BlockSpec((BB, OPAD), lambda i: (i, 0)),
        ),
        compiler_params=pltpu.CompilerParams(
            dimension_semantics=("parallel",),     # batch-tile axis: shards over v7x's 2 TCs
            vmem_limit_bytes=vmem_limit),
    )(t_flat, b_flat, wc_t, wfc_pad, bias_pad)

    return out[:B, :2]                               # (B, 2)


def local_detector_reference(target_feat, box_feat, conv_w, fc_w, fc_b):
    # pure-JAX reference matching the PyTorch forward exactly
    z = jnp.einsum("oc,bchw->bohw", conv_w, target_feat)
    x = jnp.einsum("oc,bchw->bohw", conv_w, box_feat)
    corr = jnp.maximum(jnp.sum(z * x, axis=(2, 3)), 0.0)   # xcorr_depthwise + relu -> (B, C)
    return corr @ fc_w.T + fc_b


if __name__ == "__main__":
    feat_size = 16
    in_channel = 4
    batch = 2

    key = jax.random.PRNGKey(0)
    k_t, k_b, k_conv, k_fc = jax.random.split(key, 4)

    target_feat = jax.random.normal(
        k_t, (batch, in_channel, feat_size, feat_size), dtype=jnp.float32)
    box_feat = jax.random.normal(
        k_b, (batch, in_channel, feat_size, feat_size), dtype=jnp.float32)

    # Deterministic synthetic parameters (shapes match nn.Conv2d(c,c,1,bias=False)
    # and nn.Linear(c,2) with normal(std=0.01) weights / zero bias).
    conv_w = 0.1 * jax.random.normal(k_conv, (in_channel, in_channel), dtype=jnp.float32)
    fc_w = 0.01 * jax.random.normal(k_fc, (2, in_channel), dtype=jnp.float32)
    fc_b = jnp.zeros((2,), dtype=jnp.float32)

    score = local_detector_forward(target_feat, box_feat, conv_w, fc_w, fc_b)
    score = jax.block_until_ready(score)
    assert score.shape == (batch, 2)

    # Reference computed on the same bf16-rounded inputs the kernel consumes (f32 math).
    # TODO(synk): users needing strict f32 PyTorch parity should pass compute_dtype=jnp.float32.
    as_bf16 = lambda a: a.astype(jnp.bfloat16).astype(jnp.float32)
    ref = local_detector_reference(as_bf16(target_feat), as_bf16(box_feat),
                                   as_bf16(conv_w), fc_w, fc_b)
    assert jnp.allclose(score, ref, atol=2e-3, rtol=2e-2), (score, ref)

    print("KERNEL_OK")
</pallas_src>

<mosaic_0001>
module attributes {stable_mosaic.version = 11 : i64} {
  func.func @kernel(%arg0: i32, %arg1: memref<2048x4xbf16, #tpu.memory_space<vmem>>, %arg2: memref<2048x4xbf16, #tpu.memory_space<vmem>>, %arg3: memref<4x4xbf16, #tpu.memory_space<vmem>>, %arg4: memref<4x128xf32, #tpu.memory_space<vmem>>, %arg5: memref<1x128xf32, #tpu.memory_space<vmem>>, %arg6: memref<8x128xf32, #tpu.memory_space<vmem>>) attributes {dimension_semantics = [#tpu.dimension_semantics<parallel>], iteration_bounds = array<i64: 1>, scalar_prefetch = 0 : i64, scratch_operands = 0 : i64, tpu.core_type = #tpu.core_type<tc>, window_params = [{transform_indices = @transform_0, window_bounds = array<i64: 2048, 4>}, {transform_indices = @transform_1, window_bounds = array<i64: 2048, 4>}, {pipeline_mode = #tpu.pipeline_mode<synchronous>, transform_indices = @transform_2, window_bounds = array<i64: 4, 4>}, {pipeline_mode = #tpu.pipeline_mode<synchronous>, transform_indices = @transform_3, window_bounds = array<i64: 4, 128>}, {pipeline_mode = #tpu.pipeline_mode<synchronous>, transform_indices = @transform_4, window_bounds = array<i64: 1, 128>}, {transform_indices = @transform_5, window_bounds = array<i64: 8, 128>}]} {
    %c0 = arith.constant 0 : index
    %c0_0 = arith.constant 0 : index
    %0 = vector.load %arg3[%c0, %c0_0] : memref<4x4xbf16, #tpu.memory_space<vmem>>, vector<4x4xbf16>
    %c0_1 = arith.constant 0 : index
    %c0_2 = arith.constant 0 : index
    %1 = vector.load %arg1[%c0_1, %c0_2] : memref<2048x4xbf16, #tpu.memory_space<vmem>>, vector<2048x4xbf16>
    %cst = arith.constant dense<0.000000e+00> : vector<2048x4xf32>
    %2 = tpu.matmul %1, %0, %cst {dimension_numbers = #tpu.dot_dimension_numbers<[1], [0], [0], [1], [0, 0, 1, 1], [], []>} : vector<2048x4xbf16>, vector<4x4xbf16>, vector<2048x4xf32> -> vector<2048x4xf32>
    %c0_3 = arith.constant 0 : index
    %c0_4 = arith.constant 0 : index
    %3 = vector.load %arg2[%c0_3, %c0_4] : memref<2048x4xbf16, #tpu.memory_space<vmem>>, vector<2048x4xbf16>
    %cst_5 = arith.constant dense<0.000000e+00> : vector<2048x4xf32>
    %4 = tpu.matmul %3, %0, %cst_5 {dimension_numbers = #tpu.dot_dimension_numbers<[1], [0], [0], [1], [0, 0, 1, 1], [], []>} : vector<2048x4xbf16>, vector<4x4xbf16>, vector<2048x4xf32> -> vector<2048x4xf32>
    %5 = arith.mulf %2, %4 : vector<2048x4xf32>
    %6 = vector.shape_cast %5 : vector<2048x4xf32> to vector<8x256x4xf32>
    %cst_6 = arith.constant dense<0.000000e+00> : vector<8x4xf32>
    %7 = vector.multi_reduction <add>, %6, %cst_6 [1] : vector<8x256x4xf32> to vector<8x4xf32>
    %cst_7 = arith.constant 0.000000e+00 : f32
    %8 = vector.broadcast %cst_7 : f32 to vector<8x4xf32>
    %9 = arith.maximumf %7, %8 : vector<8x4xf32>
    %c0_8 = arith.constant 0 : index
    %c0_9 = arith.constant 0 : index
    %10 = vector.load %arg4[%c0_8, %c0_9] : memref<4x128xf32, #tpu.memory_space<vmem>>, vector<4x128xf32>
    %cst_10 = arith.constant dense<0.000000e+00> : vector<8x128xf32>
    %11 = tpu.matmul %9, %10, %cst_10 {dimension_numbers = #tpu.dot_dimension_numbers<[1], [0], [0], [1], [0, 0, 1, 1], [], []>} : vector<8x4xf32>, vector<4x128xf32>, vector<8x128xf32> -> vector<8x128xf32>
    %c0_11 = arith.constant 0 : index
    %c0_12 = arith.constant 0 : index
    %12 = vector.load %arg5[%c0_11, %c0_12] : memref<1x128xf32, #tpu.memory_space<vmem>>, vector<1x128xf32>
    %13 = vector.broadcast %12 : vector<1x128xf32> to vector<8x128xf32>
    %14 = arith.addf %11, %13 : vector<8x128xf32>
    %c0_13 = arith.constant 0 : index
    %c0_14 = arith.constant 0 : index
    %15 = vector.load %arg6[%c0_13, %c0_14] : memref<8x128xf32, #tpu.memory_space<vmem>>, vector<8x128xf32>
    tpu.vector_store %arg6[%c0_13, %c0_14], %14 {strides = array<i32>} : memref<8x128xf32, #tpu.memory_space<vmem>>, vector<8x128xf32>,
    return
  }
  func.func @transform_0(%arg0: i32) -> (i32, i32) {
    %c0_i32 = arith.constant 0 : i32
    %c0_i32_0 = arith.constant 0 : i32
    return %arg0, %c0_i32 : i32, i32
  }
  func.func @transform_1(%arg0: i32) -> (i32, i32) {
    %c0_i32 = arith.constant 0 : i32
    %c0_i32_0 = arith.constant 0 : i32
    return %arg0, %c0_i32 : i32, i32
  }
  func.func @transform_2(%arg0: i32) -> (i32, i32) {
    %c0_i32 = arith.constant 0 : i32
    %c0_i32_0 = arith.constant 0 : i32
    %c0_i32_1 = arith.constant 0 : i32
    return %c0_i32, %c0_i32_0 : i32, i32
  }
  func.func @transform_3(%arg0: i32) -> (i32, i32) {
    %c0_i32 = arith.constant 0 : i32
    %c0_i32_0 = arith.constant 0 : i32
    %c0_i32_1 = arith.constant 0 : i32
    return %c0_i32, %c0_i32_0 : i32, i32
  }
  func.func @transform_4(%arg0: i32) -> (i32, i32) {
    %c0_i32 = arith.constant 0 : i32
    %c0_i32_0 = arith.constant 0 : i32
    %c0_i32_1 = arith.constant 0 : i32
    return %c0_i32, %c0_i32_0 : i32, i32
  }
  func.func @transform_5(%arg0: i32) -> (i32, i32) {
    %c0_i32 = arith.constant 0 : i32
    %c0_i32_0 = arith.constant 0 : i32
    return %arg0, %c0_i32 : i32, i32
  }
}

</mosaic_0001>

<bundles_post_ra>
// kernel: tpu_custom_call.1
= control target key start
LH: loop header
LB: loop body
LE: loop exit
PB: predicated region body
PF: predicated region fallthrough
CT: control target
= control target key end

     0   :  { %vm1304_vm0 = vcmask 1041408   ;;  %vm919_vm1 = vcmask 31744   ;;  %v7218_v56 = vmov 0.0   ;;  %vm5550_vm2 = vcmask 1043456   ;;  %s8568_s0 = inlined_call_operand.vmem [shape: bf16[2048,4], index: 0, kind: input, shape index: {}]   ;;  %s8569_s1 = inlined_call_operand.vmem [shape: bf16[2048,4], index: 1, kind: input, shape index: {}]   ;;  %s8570_s2 = inlined_call_operand.vmem [shape: bf16[4,4], index: 2, kind: input, shape index: {}]   ;;  %s8571_s3 = inlined_call_operand.vmem [shape: f32[4,128], index: 3, kind: input, shape index: {}]   ;;  %s8572_s4 = inlined_call_operand.vmem [shape: f32[1,128], index: 4, kind: input, shape index: {}]   ;;  %s8573_s5 = inlined_call_operand.hbm [shape: f32[8,128], index: 5, kind: output, shape index: {}]  }
   0x1   :  { %v22_v0 = vld [vmem:[%s8570_s2] sm:$0x3]  ;;  %v6942_v4 = vld [vmem:[%s8568_s0 + $0x8] sm:$0xff]   ;;  %v6944_v6 = vld [vmem:[%s8568_s0 + $0x10] sm:$0xff]  }
   0x2   :  { %v6940_v1 = vld [vmem:[%s8568_s0] sm:$0xff]   ;;  %6935 = vmatprep.subr.msk.bf16.mxu0 %vm1304_vm0, %v22_v0  ;;  %6936 = vmatprep.subr.msk.bf16.mxu1 %vm1304_vm0, %v22_v0  ;;  %v1306_v2 = vsel %vm1304_vm0, %v22_v0, 0  ;;  %v6943_v5 = vld [vmem:[%s8569_s1 + $0x8] sm:$0xff]   ;;  %v6945_v7 = vld [vmem:[%s8569_s1 + $0x10] sm:$0xff]  }
   0x3   :  { %6415 = vmatpush3.bf16.msra.mxu0 %v1306_v2  ;;  %6673 = vmatpush3.bf16.msra.mxu1 %v1306_v2  ;;  %v6941_v3 = vld [vmem:[%s8569_s1] sm:$0xff]   ;;  %v6946_v8 = vld [vmem:[%s8568_s0 + $0x18] sm:$0xff]   ;;  %v6950_v12 = vld [vmem:[%s8568_s0 + $0x28] sm:$0xff]  }
   0x4   :  { %6416 = vmatprep.mubr.msk.bf16.mxu0 %vm919_vm1, %v6940_v1  ;;  %6674 = vmatprep.mubr.msk.bf16.mxu1 %vm919_vm1, %v6941_v3  ;;  %v6947_v9 = vld [vmem:[%s8569_s1 + $0x18] sm:$0xff]   ;;  %v6948_v10 = vld [vmem:[%s8568_s0 + $0x20] sm:$0xff]   ;;  %v6951_v13 = vld [vmem:[%s8569_s1 + $0x28] sm:$0xff]  }
   0x5   :  { %v6949_v11 = vld [vmem:[%s8569_s1 + $0x20] sm:$0xff]   ;;  %v6952_v14 = vld [vmem:[%s8568_s0 + $0x30] sm:$0xff]   ;;  %v6954_v16 = vld [vmem:[%s8568_s0 + $0x38] sm:$0xff]   ;;  %6930 = vmatprep.subr.mxu0 %v7218_v56 }
   0x6   :  { %6417 = vmatmul.mubr.msk.bf16.vlgmr.msra.gmra.mxu0 %vm919_vm1, %v6942_v4  ;;  %6675 = vmatmul.mubr.msk.bf16.vlgmr.msra.gmra.mxu1 %vm919_vm1, %v6943_v5  ;;  %v6953_v15 = vld [vmem:[%s8569_s1 + $0x30] sm:$0xff]   ;;  %v6955_v17 = vld [vmem:[%s8569_s1 + $0x38] sm:$0xff]   ;;  %v6956_v18 = vld [vmem:[%s8568_s0 + $0x40] sm:$0xff]  }
   0x7   :  { %6420 = vmatprep.mubr.msk.bf16.mxu0 %vm919_vm1, %v6944_v6  ;;  %6678 = vmatprep.mubr.msk.bf16.mxu1 %vm919_vm1, %v6945_v7  ;;  %v6957_v19 = vld [vmem:[%s8569_s1 + $0x40] sm:$0xff]   ;;  %v6958_v20 = vld [vmem:[%s8568_s0 + $0x48] sm:$0xff]   ;;  %v6960_v22 = vld [vmem:[%s8568_s0 + $0x50] sm:$0xff]  }
   0x8   :  { %v6959_v21 = vld [vmem:[%s8569_s1 + $0x48] sm:$0xff]   ;;  %v6961_v23 = vld [vmem:[%s8569_s1 + $0x50] sm:$0xff]   ;;  %v6962_v24 = vld [vmem:[%s8568_s0 + $0x58] sm:$0xff]  }
   0x9   :  { %v6963_v25 = vld [vmem:[%s8569_s1 + $0x58] sm:$0xff]   ;;  %v6964_v26 = vld [vmem:[%s8568_s0 + $0x60] sm:$0xff]   ;;  %v6966_v28 = vld [vmem:[%s8568_s0 + $0x68] sm:$0xff]  }
   0xa   :  { %v6965_v27 = vld [vmem:[%s8569_s1 + $0x60] sm:$0xff]   ;;  %v6967_v29 = vld [vmem:[%s8569_s1 + $0x68] sm:$0xff]   ;;  %v6968_v30 = vld [vmem:[%s8568_s0 + $0x70] sm:$0xff]  }
   0xb   :  { %v6969_v31 = vld [vmem:[%s8569_s1 + $0x70] sm:$0xff]   ;;  %v6970_v32 = vld [vmem:[%s8568_s0 + $0x78] sm:$0xff]   ;;  %v6972_v34 = vld [vmem:[%s8568_s0 + $0x80] sm:$0xff]  }
   0xc   :  { %v6971_v33 = vld [vmem:[%s8569_s1 + $0x78] sm:$0xff]   ;;  %v6973_v35 = vld [vmem:[%s8569_s1 + $0x80] sm:$0xff]   ;;  %v6974_v36 = vld [vmem:[%s8568_s0 + $0x88] sm:$0xff]  }
   0xd   :  { %v6975_v37 = vld [vmem:[%s8569_s1 + $0x88] sm:$0xff]   ;;  %v6976_v38 = vld [vmem:[%s8568_s0 + $0x90] sm:$0xff]   ;;  %v6978_v40 = vld [vmem:[%s8568_s0 + $0x98] sm:$0xff]  }
   0xe   :  { %6421 = vmatmul.mubr.msk.bf16.gmra.mxu0 %vm919_vm1, %v6946_v8  ;;  %6679 = vmatmul.mubr.msk.bf16.gmra.mxu1 %vm919_vm1, %v6947_v9  ;;  %v6977_v39 = vld [vmem:[%s8569_s1 + $0x90] sm:$0xff]   ;;  %v6979_v41 = vld [vmem:[%s8569_s1 + $0x98] sm:$0xff]   ;;  %v6980_v42 = vld [vmem:[%s8568_s0 + $0xa0] sm:$0xff]  }
   0xf   :  { %6424 = vmatprep.mubr.msk.bf16.mxu0 %vm919_vm1, %v6948_v10  ;;  %6682 = vmatprep.mubr.msk.bf16.mxu1 %vm919_vm1, %v6949_v11  ;;  %v6981_v43 = vld [vmem:[%s8569_s1 + $0xa0] sm:$0xff]   ;;  %v6982_v44 = vld [vmem:[%s8568_s0 + $0xa8] sm:$0xff]   ;;  %v6984_v46 = vld [vmem:[%s8568_s0 + $0xb0] sm:$0xff]  }
  0x10   :  { %v6983_v45 = vld [vmem:[%s8569_s1 + $0xa8] sm:$0xff]   ;;  %v6985_v47 = vld [vmem:[%s8569_s1 + $0xb0] sm:$0xff]   ;;  %v6986_v48 = vld [vmem:[%s8568_s0 + $0xb8] sm:$0xff]  }
  0x11   :  { %v6987_v49 = vld [vmem:[%s8569_s1 + $0xb8] sm:$0xff]   ;;  %v6988_v50 = vld [vmem:[%s8568_s0 + $0xc0] sm:$0xff]   ;;  %v6990_v52 = vld [vmem:[%s8568_s0 + $0xc8] sm:$0xff]  }
  0x12   :  { %v6989_v51 = vld [vmem:[%s8569_s1 + $0xc0] sm:$0xff]   ;;  %v6991_v53 = vld [vmem:[%s8569_s1 + $0xc8] sm:$0xff]   ;;  %v6992_v54 = vld [vmem:[%s8568_s0 + $0xd0] sm:$0xff]  }
  0x13   :  { %v6993_v55 = vld [vmem:[%s8569_s1 + $0xd0] sm:$0xff]   ;;  %v6994_v57 = vld [vmem:[%s8568_s0 + $0xd8] sm:$0xff]   ;;  %v6996_v59 = vld [vmem:[%s8568_s0 + $0xe0] sm:$0xff]  }
  0x14   :  { %v6995_v58 = vld [vmem:[%s8569_s1 + $0xd8] sm:$0xff]   ;;  %v6997_v60 = vld [vmem:[%s8569_s1 + $0xe0] sm:$0xff]   ;;  %v6998_v62 = vld [vmem:[%s8568_s0 + $0xe8] sm:$0xff]  }
  0x15   :  { %v5518_v61 = vld [vmem:[%s8571_s3] sm:$0xf]  ;;  %v6999_v63 = vld [vmem:[%s8569_s1 + $0xe8] sm:$0xff]   ;;  %v7000_v0 = vld [vmem:[%s8568_s0 + $0xf0] sm:$0xff]  }
  0x16   :  { %6425 = vmatmul.mubr.msk.bf16.gmra.mxu0 %vm919_vm1, %v6950_v12  ;;  %6683 = vmatmul.mubr.msk.bf16.gmra.mxu1 %vm919_vm1, %v6951_v13  ;;  %v7001_v1 = vld [vmem:[%s8569_s1 + $0xf0] sm:$0xff]   ;;  %v7002_v2 = vld [vmem:[%s8568_s0 + $0xf8] sm:$0xff]   ;;  %v7004_v4 = vld [vmem:[%s8568_s0 + $0x100] sm:$0xff]  }
  0x17   :  { %6428 = vmatprep.mubr.msk.bf16.mxu0 %vm919_vm1, %v6952_v14  ;;  %6686 = vmatprep.mubr.msk.bf16.mxu1 %vm919_vm1, %v6953_v15  ;;  %v7003_v3 = vld [vmem:[%s8569_s1 + $0xf8] sm:$0xff]   ;;  %v7005_v5 = vld [vmem:[%s8569_s1 + $0x100] sm:$0xff]   ;;  %v7006_v6 = vld [vmem:[%s8568_s0 + $0x108] sm:$0xff]  }
  0x18   :  { %6931 = vmatpush3.msk.msra.mxu0 %vm5550_vm2, %v5518_v61  ;;  %v7007_v7 = vld [vmem:[%s8569_s1 + $0x108] sm:$0xff]   ;;  %v7008_v8 = vld [vmem:[%s8568_s0 + $0x110] sm:$0xff]   ;;  %v7010_v10 = vld [vmem:[%s8568_s0 + $0x118] sm:$0xff]  }
  0x19   :  { %v7009_v9 = vld [vmem:[%s8569_s1 + $0x110] sm:$0xff]   ;;  %v7011_v11 = vld [vmem:[%s8569_s1 + $0x118] sm:$0xff]   ;;  %v7012_v12 = vld [vmem:[%s8568_s0 + $0x120] sm:$0xff]  }
  0x1a   :  { %v7013_v13 = vld [vmem:[%s8569_s1 + $0x120] sm:$0xff]   ;;  %v7014_v14 = vld [vmem:[%s8568_s0 + $0x128] sm:$0xff]  }
  0x1b   :  { %v7015_v15 = vld [vmem:[%s8569_s1 + $0x128] sm:$0xff]  }
  0x1e   :  { %6429 = vmatmul.mubr.msk.bf16.gmra.mxu0 %vm919_vm1, %v6954_v16  ;;  %6687 = vmatmul.mubr.msk.bf16.gmra.mxu1 %vm919_vm1, %v6955_v17  ;;  %v7016_v16 = vld [vmem:[%s8568_s0 + $0x130] sm:$0xff]  }
  0x1f   :  { %6432 = vmatprep.mubr.msk.bf16.mxu0 %vm919_vm1, %v6956_v18  ;;  %6690 = vmatprep.mubr.msk.bf16.mxu1 %vm919_vm1, %v6957_v19  ;;  %v7017_v17 = vld [vmem:[%s8569_s1 + $0x130] sm:$0xff]   ;;  %v7018_v18 = vld [vmem:[%s8568_s0 + $0x138] sm:$0xff]  }
  0x20   :  { %v7019_v19 = vld [vmem:[%s8569_s1 + $0x138] sm:$0xff]  }
  0x26   :  { %6433 = vmatmul.mubr.msk.bf16.gmra.mxu0 %vm919_vm1, %v6958_v20  ;;  %6691 = vmatmul.mubr.msk.bf16.gmra.mxu1 %vm919_vm1, %v6959_v21  ;;  %v7020_v20 = vld [vmem:[%s8568_s0 + $0x140] sm:$0xff]  }
  0x27   :  { %6436 = vmatprep.mubr.msk.bf16.mxu0 %vm919_vm1, %v6960_v22  ;;  %6694 = vmatprep.mubr.msk.bf16.mxu1 %vm919_vm1, %v6961_v23  ;;  %v7021_v21 = vld [vmem:[%s8569_s1 + $0x140] sm:$0xff]   ;;  %v7022_v22 = vld [vmem:[%s8568_s0 + $0x148] sm:$0xff]  }
  0x28   :  { %v7023_v23 = vld [vmem:[%s8569_s1 + $0x148] sm:$0xff]  }
  0x2e   :  { %6437 = vmatmul.mubr.msk.bf16.gmra.mxu0 %vm919_vm1, %v6962_v24  ;;  %6695 = vmatmul.mubr.msk.bf16.gmra.mxu1 %vm919_vm1, %v6963_v25  ;;  %v7024_v24 = vld [vmem:[%s8568_s0 + $0x150] sm:$0xff]  }
  0x2f   :  { %6440 = vmatprep.mubr.msk.bf16.mxu0 %vm919_vm1, %v6964_v26  ;;  %6698 = vmatprep.mubr.msk.bf16.mxu1 %vm919_vm1, %v6965_v27  ;;  %v7025_v25 = vld [vmem:[%s8569_s1 + $0x150] sm:$0xff]   ;;  %v7026_v26 = vld [vmem:[%s8568_s0 + $0x158] sm:$0xff]  }
  0x30   :  { %v7027_v27 = vld [vmem:[%s8569_s1 + $0x158] sm:$0xff]  }
  0x36   :  { %6441 = vmatmul.mubr.msk.bf16.gmra.mxu0 %vm919_vm1, %v6966_v28  ;;  %6699 = vmatmul.mubr.msk.bf16.gmra.mxu1 %vm919_vm1, %v6967_v29  ;;  %v7028_v28 = vld [vmem:[%s8568_s0 + $0x160] sm:$0xff]  }
  0x37   :  { %6444 = vmatprep.mubr.msk.bf16.mxu0 %vm919_vm1, %v6968_v30  ;;  %6702 = vmatprep.mubr.msk.bf16.mxu1 %vm919_vm1, %v6969_v31  ;;  %v7029_v29 = vld [vmem:[%s8569_s1 + $0x160] sm:$0xff]   ;;  %v7030_v30 = vld [vmem:[%s8568_s0 + $0x168] sm:$0xff]  }
  0x38   :  { %v7031_v31 = vld [vmem:[%s8569_s1 + $0x168] sm:$0xff]  }
  0x3e   :  { %6445 = vmatmul.mubr.msk.bf16.gmra.mxu0 %vm919_vm1, %v6970_v32  ;;  %6703 = vmatmul.mubr.msk.bf16.gmra.mxu1 %vm919_vm1, %v6971_v33  ;;  %v7032_v32 = vld [vmem:[%s8568_s0 + $0x170] sm:$0xff]  }
  0x3f   :  { %6448 = vmatprep.mubr.msk.bf16.mxu0 %vm919_vm1, %v6972_v34  ;;  %6706 = vmatprep.mubr.msk.bf16.mxu1 %vm919_vm1, %v6973_v35  ;;  %v7033_v33 = vld [vmem:[%s8569_s1 + $0x170] sm:$0xff]   ;;  %v7034_v34 = vld [vmem:[%s8568_s0 + $0x178] sm:$0xff]  }
  0x40   :  { %v7035_v35 = vld [vmem:[%s8569_s1 + $0x178] sm:$0xff]  }
  0x46   :  { %6449 = vmatmul.mubr.msk.bf16.gmra.mxu0 %vm919_vm1, %v6974_v36  ;;  %6707 = vmatmul.mubr.msk.bf16.gmra.mxu1 %vm919_vm1, %v6975_v37  ;;  %v7036_v36 = vld [vmem:[%s8568_s0 + $0x180] sm:$0xff]  }
  0x47   :  { %6452 = vmatprep.mubr.msk.bf16.mxu0 %vm919_vm1, %v6976_v38  ;;  %6710 = vmatprep.mubr.msk.bf16.mxu1 %vm919_vm1, %v6977_v39  ;;  %v7037_v37 = vld [vmem:[%s8569_s1 + $0x180] sm:$0xff]   ;;  %v7038_v38 = vld [vmem:[%s8568_s0 + $0x188] sm:$0xff]  }
  0x48   :  { %v7039_v39 = vld [vmem:[%s8569_s1 + $0x188] sm:$0xff]  }
  0x4e   :  { %6453 = vmatmul.mubr.msk.bf16.gmra.mxu0 %vm919_vm1, %v6978_v40  ;;  %6711 = vmatmul.mubr.msk.bf16.gmra.mxu1 %vm919_vm1, %v6979_v41  ;;  %v7040_v40 = vld [vmem:[%s8568_s0 + $0x190] sm:$0xff]  }
  0x4f   :  { %6456 = vmatprep.mubr.msk.bf16.mxu0 %vm919_vm1, %v6980_v42  ;;  %6714 = vmatprep.mubr.msk.bf16.mxu1 %vm919_vm1, %v6981_v43  ;;  %v7041_v41 = vld [vmem:[%s8569_s1 + $0x190] sm:$0xff]  }
  0x56   :  { %6457 = vmatmul.mubr.msk.bf16.gmra.mxu0 %vm919_vm1, %v6982_v44  ;;  %6715 = vmatmul.mubr.msk.bf16.gmra.mxu1 %vm919_vm1, %v6983_v45 }
  0x57   :  { %6460 = vmatprep.mubr.msk.bf16.mxu0 %vm919_vm1, %v6984_v46  ;;  %6718 = vmatprep.mubr.msk.bf16.mxu1 %vm919_vm1, %v6985_v47  ;;  %v7042_v46 = vld [vmem:[%s8568_s0 + $0x198] sm:$0xff]  }
  0x5e   :  { %6461 = vmatmul.mubr.msk.bf16.gmra.mxu0 %vm919_vm1, %v6986_v48  ;;  %6719 = vmatmul.mubr.msk.bf16.gmra.mxu1 %vm919_vm1, %v6987_v49  ;;  %v7043_v48 = vld [vmem:[%s8569_s1 + $0x198] sm:$0xff]  }
  0x5f   :  { %6464 = vmatprep.mubr.msk.bf16.mxu0 %vm919_vm1, %v6988_v50  ;;  %6722 = vmatprep.mubr.msk.bf16.mxu1 %vm919_vm1, %v6989_v51  ;;  %v7044_v51 = vld [vmem:[%s8568_s0 + $0x1a0] sm:$0xff]  }
  0x66   :  { %6465 = vmatmul.mubr.msk.bf16.gmra.mxu0 %vm919_vm1, %v6990_v52  ;;  %6723 = vmatmul.mubr.msk.bf16.gmra.mxu1 %vm919_vm1, %v6991_v53 }
  0x67   :  { %6468 = vmatprep.mubr.msk.bf16.mxu0 %vm919_vm1, %v6992_v54  ;;  %6726 = vmatprep.mubr.msk.bf16.mxu1 %vm919_vm1, %v6993_v55  ;;  %v7045_v55 = vld [vmem:[%s8569_s1 + $0x1a0] sm:$0xff]  }
  0x6e   :  { %6469 = vmatmul.mubr.msk.bf16.gmra.mxu0 %vm919_vm1, %v6994_v57  ;;  %6727 = vmatmul.mubr.msk.bf16.gmra.mxu1 %vm919_vm1, %v6995_v58 }
  0x6f   :  { %6472 = vmatprep.mubr.msk.bf16.mxu0 %vm919_vm1, %v6996_v59  ;;  %6730 = vmatprep.mubr.msk.bf16.mxu1 %vm919_vm1, %v6997_v60 }
  0x76   :  { %6473 = vmatmul.mubr.msk.bf16.gmra.mxu0 %vm919_vm1, %v6998_v62  ;;  %6731 = vmatmul.mubr.msk.bf16.gmra.mxu1 %vm919_vm1, %v6999_v63 }
  0x77   :  { %6476 = vmatprep.mubr.msk.bf16.mxu0 %vm919_vm1, %v7000_v0  ;;  %6734 = vmatprep.mubr.msk.bf16.mxu1 %vm919_vm1, %v7001_v1  ;;  %v7046_v1 = vld [vmem:[%s8568_s0 + $0x1a8] sm:$0xff]  }
  0x7e   :  { %6477 = vmatmul.mubr.msk.bf16.gmra.mxu0 %vm919_vm1, %v7002_v2  ;;  %6735 = vmatmul.mubr.msk.bf16.gmra.mxu1 %vm919_vm1, %v7003_v3 }
  0x7f   :  { %6480 = vmatprep.mubr.msk.bf16.mxu0 %vm919_vm1, %v7004_v4  ;;  %6738 = vmatprep.mubr.msk.bf16.mxu1 %vm919_vm1, %v7005_v5  ;;  %v7047_v4 = vld [vmem:[%s8569_s1 + $0x1a8] sm:$0xff]  }
  0x86   :  { %6481 = vmatmul.mubr.msk.bf16.gmra.mxu0 %vm919_vm1, %v7006_v6  ;;  %6739 = vmatmul.mubr.msk.bf16.gmra.mxu1 %vm919_vm1, %v7007_v7 }
  0x87   :  { %6484 = vmatprep.mubr.msk.bf16.mxu0 %vm919_vm1, %v7008_v8  ;;  %6742 = vmatprep.mubr.msk.bf16.mxu1 %vm919_vm1, %v7009_v9  ;;  %v7048_v8 = vld [vmem:[%s8568_s0 + $0x1b0] sm:$0xff]  }
  0x8e   :  { %6485 = vmatmul.mubr.msk.bf16.gmra.mxu0 %vm919_vm1, %v7010_v10  ;;  %6743 = vmatmul.mubr.msk.bf16.gmra.mxu1 %vm919_vm1, %v7011_v11 }
  0x8f   :  { %6488 = vmatprep.mubr.msk.bf16.mxu0 %vm919_vm1, %v7012_v12  ;;  %6746 = vmatprep.mubr.msk.bf16.mxu1 %vm919_vm1, %v7013_v13 }
  0x96   :  { %6489 = vmatmul.mubr.msk.bf16.gmra.mxu0 %vm919_vm1, %v7014_v14  ;;  %6747 = vmatmul.mubr.msk.bf16.gmra.mxu1 %vm919_vm1, %v7015_v15  ;;  %v7049_v14 = vld [vmem:[%s8569_s1 + $0x1b0] sm:$0xff]  }
  0x97   :  { %6492 = vmatprep.mubr.msk.bf16.mxu0 %vm919_vm1, %v7016_v16  ;;  %6750 = vmatprep.mubr.msk.bf16.mxu1 %vm919_vm1, %v7017_v17 }
  0x9e   :  { %6493 = vmatmul.mubr.msk.bf16.gmra.mxu0 %vm919_vm1, %v7018_v18  ;;  %6751 = vmatmul.mubr.msk.bf16.gmra.mxu1 %vm919_vm1, %v7019_v19 }
  0x9f   :  { %6496 = vmatprep.mubr.msk.bf16.mxu0 %vm919_vm1, %v7020_v20  ;;  %6754 = vmatprep.mubr.msk.bf16.mxu1 %vm919_vm1, %v7021_v21 }
  0xa6   :  { %6497 = vmatmul.mubr.msk.bf16.gmra.mxu0 %vm919_vm1, %v7022_v22  ;;  %6755 = vmatmul.mubr.msk.bf16.gmra.mxu1 %vm919_vm1, %v7023_v23 }
  0xa7   :  { %6500 = vmatprep.mubr.msk.bf16.mxu0 %vm919_vm1, %v7024_v24  ;;  %6758 = vmatprep.mubr.msk.bf16.mxu1 %vm919_vm1, %v7025_v25  ;;  %v7050_v25 = vld [vmem:[%s8568_s0 + $0x1b8] sm:$0xff]  }
  0xae   :  { %6501 = vmatmul.mubr.msk.bf16.gmra.mxu0 %vm919_vm1, %v7026_v26  ;;  %6759 = vmatmul.mubr.msk.bf16.gmra.mxu1 %vm919_vm1, %v7027_v27 }
  0xaf   :  { %6504 = vmatprep.mubr.msk.bf16.mxu0 %vm919_vm1, %v7028_v28  ;;  %6762 = vmatprep.mubr.msk.bf16.mxu1 %vm919_vm1, %v7029_v29 }
  0xb6   :  { %6505 = vmatmul.mubr.msk.bf16.gmra.mxu0 %vm919_vm1, %v7030_v30  ;;  %6763 = vmatmul.mubr.msk.bf16.gmra.mxu1 %vm919_vm1, %v7031_v31  ;;  %v7051_v31 = vld [vmem:[%s8569_s1 + $0x1b8] sm:$0xff]  }
  0xb7   :  { %6508 = vmatprep.mubr.msk.bf16.mxu0 %vm919_vm1, %v7032_v32  ;;  %6766 = vmatprep.mubr.msk.bf16.mxu1 %vm919_vm1, %v7033_v33 }
  0xbe   :  { %6509 = vmatmul.mubr.msk.bf16.gmra.mxu0 %vm919_vm1, %v7034_v34  ;;  %6767 = vmatmul.mubr.msk.bf16.gmra.mxu1 %vm919_vm1, %v7035_v35  ;;  %v7052_v34 = vld [vmem:[%s8568_s0 + $0x1c0] sm:$0xff]  }
  0xbf   :  { %6512 = vmatprep.mubr.msk.bf16.mxu0 %vm919_vm1, %v7036_v36  ;;  %6770 = vmatprep.mubr.msk.bf16.mxu1 %vm919_vm1, %v7037_v37 }
  0xc6   :  { %v6418_v42 = vpop.f32.mrf.mxu0  ;;  %6513 = vmatmul.mubr.msk.bf16.gmra.mxu0 %vm919_vm1, %v7038_v38  ;;  %v6676_v43 = vpop.f32.mrf.mxu1  ;;  %6771 = vmatmul.mubr.msk.bf16.gmra.mxu1 %vm919_vm1, %v7039_v39  ;;  %v7053_v38 = vld [vmem:[%s8569_s1 + $0x1c0] sm:$0xff]  }
  0xc7   :  { %6516 = vmatprep.mubr.msk.bf16.mxu0 %vm919_vm1, %v7040_v40  ;;  %v4704_v44 = vmul.f32 %v6676_v43, %v6418_v42  ;;  %6774 = vmatprep.mubr.msk.bf16.mxu1 %vm919_vm1, %v7041_v41 }
  0xc8   :  { %v1342_v45 = vpop.f32.mrf.mxu0  ;;  %v3679_v47 = vpop.f32.mrf.mxu1 }
  0xc9   :  { %v4702_v49 = vmul.f32 %v3679_v47, %v1342_v45  ;;  %v4961_v5 = vsel %vm919_vm1, %v4704_v44, 0.0 }
  0xca   :  { %v6419_v50 = vpop.f32.mrf.mxu0  ;;  %v6677_v52 = vpop.f32.mrf.mxu1 }
  0xcb   :  { %v4705_v53 = vmul.f32 %v6677_v52, %v6419_v50  ;;  %v4958_v61 = vsel %vm919_vm1, %v4702_v49, 0.0  ;;  %v7054_v49 = vld [vmem:[%s8568_s0 + $0x1c8] sm:$0xff]  }
  0xcc   :  { %v1345_v54 = vpop.f32.mrf.mxu0  ;;  %v3682_v57 = vpop.f32.mrf.mxu1  ;;  %v7055_v52 = vld [vmem:[%s8569_s1 + $0x1c8] sm:$0xff]  }
  0xcd   :  { %v4703_v58 = vmul.f32 %v3682_v57, %v1345_v54  ;;  %v4963_v11 = vsel %vm919_vm1, %v4705_v53, 0.0  ;;  %v7056_v57 = vld [vmem:[%s8568_s0 + $0x1d0] sm:$0xff]  }
  0xce   :  { %v6422_v59 = vpop.f32.mrf.mxu0  ;;  %6517 = vmatmul.mubr.msk.bf16.gmra.mxu0 %vm919_vm1, %v7042_v46  ;;  %v6680_v60 = vpop.f32.mrf.mxu1  ;;  %6775 = vmatmul.mubr.msk.bf16.gmra.mxu1 %vm919_vm1, %v7043_v48 }
  0xcf   :  { %6520 = vmatprep.mubr.msk.bf16.mxu0 %vm919_vm1, %v7044_v51  ;;  %v4959_v62 = vsel %vm919_vm1, %v4703_v58, 0.0  ;;  %v4708_v63 = vmul.f32 %v6680_v60, %v6422_v59  ;;  %6778 = vmatprep.mubr.msk.bf16.mxu1 %vm919_vm1, %v7045_v55 }
  0xd0   :  { %v1358_v0 = vpop.f32.mrf.mxu0  ;;  %v4960_v2 = vadd.f32 %v4959_v62, %v4958_v61  ;;  %v3695_v3 = vpop.f32.mrf.mxu1 }
  0xd1   :  { %v4706_v6 = vmul.f32 %v3695_v3, %v1358_v0  ;;  %v4969_v28 = vsel %vm919_vm1, %v4708_v63, 0.0  ;;  %v7057_v63 = vld [vmem:[%s8569_s1 + $0x1d0] sm:$0xff]  }
  0xd2   :  { %v6423_v7 = vpop.f32.mrf.mxu0  ;;  %v4962_v9 = vadd.f32 %v4961_v5, %v4960_v2  ;;  %v6681_v10 = vpop.f32.mrf.mxu1 }
  0xd3   :  { %v4709_v12 = vmul.f32 %v6681_v10, %v6423_v7  ;;  %v4965_v17 = vsel %vm919_vm1, %v4706_v6, 0.0  ;;  %v7058_v10 = vld [vmem:[%s8568_s0 + $0x1d8] sm:$0xff]  }
  0xd4   :  { %v1361_v13 = vpop.f32.mrf.mxu0  ;;  %v4964_v15 = vadd.f32 %v4963_v11, %v4962_v9  ;;  %v3698_v16 = vpop.f32.mrf.mxu1 }
  0xd5   :  { %v4707_v18 = vmul.f32 %v3698_v16, %v1361_v13  ;;  %v4971_v35 = vsel %vm919_vm1, %v4709_v12, 0.0  ;;  %v7059_v13 = vld [vmem:[%s8569_s1 + $0x1d8] sm:$0xff]  }
  0xd6   :  { %v6426_v19 = vpop.f32.mrf.mxu0  ;;  %6521 = vmatmul.mubr.msk.bf16.gmra.mxu0 %vm919_vm1, %v7046_v1  ;;  %v4966_v20 = vadd.f32 %v4965_v17, %v4964_v15  ;;  %v6684_v21 = vpop.f32.mrf.mxu1  ;;  %6779 = vmatmul.mubr.msk.bf16.gmra.mxu1 %vm919_vm1, %v7047_v4  ;;  %v7060_v17 = vld [vmem:[%s8568_s0 + $0x1e0] sm:$0xff]  }
  0xd7   :  { %6524 = vmatprep.mubr.msk.bf16.mxu0 %vm919_vm1, %v7048_v8  ;;  %v4967_v22 = vsel %vm919_vm1, %v4707_v18, 0.0  ;;  %v4712_v23 = vmul.f32 %v6684_v21, %v6426_v19  ;;  %6782 = vmatprep.mubr.msk.bf16.mxu1 %vm919_vm1, %v7049_v14 }
  0xd8   :  { %v1374_v24 = vpop.f32.mrf.mxu0  ;;  %v4968_v26 = vadd.f32 %v4967_v22, %v4966_v20  ;;  %v3711_v27 = vpop.f32.mrf.mxu1 }
  0xd9   :  { %v4710_v29 = vmul.f32 %v3711_v27, %v1374_v24  ;;  %v4977_v53 = vsel %vm919_vm1, %v4712_v23, 0.0  ;;  %v7061_v23 = vld [vmem:[%s8569_s1 + $0x1e0] sm:$0xff]  }
  0xda   :  { %v6427_v30 = vpop.f32.mrf.mxu0  ;;  %v4970_v32 = vadd.f32 %v4969_v28, %v4968_v26  ;;  %v6685_v33 = vpop.f32.mrf.mxu1 }
  0xdb   :  { %v4713_v36 = vmul.f32 %v6685_v33, %v6427_v30  ;;  %v4973_v41 = vsel %vm919_vm1, %v4710_v29, 0.0 }
  0xdc   :  { %v1377_v37 = vpop.f32.mrf.mxu0  ;;  %v4972_v39 = vadd.f32 %v4971_v35, %v4970_v32  ;;  %v3714_v40 = vpop.f32.mrf.mxu1 }
  0xdd   :  { %v4711_v42 = vmul.f32 %v3714_v40, %v1377_v37  ;;  %v4979_v60 = vsel %vm919_vm1, %v4713_v36, 0.0 }
  0xde   :  { %v6430_v43 = vpop.f32.mrf.mxu0  ;;  %6525 = vmatmul.mubr.msk.bf16.gmra.mxu0 %vm919_vm1, %v7050_v25  ;;  %v4974_v44 = vadd.f32 %v4973_v41, %v4972_v39  ;;  %v6688_v45 = vpop.f32.mrf.mxu1  ;;  %6783 = vmatmul.mubr.msk.bf16.gmra.mxu1 %vm919_vm1, %v7051_v31 }
  0xdf   :  { %6528 = vmatprep.mubr.msk.bf16.mxu0 %vm919_vm1, %v7052_v34  ;;  %v4975_v46 = vsel %vm919_vm1, %v4711_v42, 0.0  ;;  %v4716_v47 = vmul.f32 %v6688_v45, %v6430_v43  ;;  %6786 = vmatprep.mubr.msk.bf16.mxu1 %vm919_vm1, %v7053_v38 }
  0xe0   :  { %v1390_v48 = vpop.f32.mrf.mxu0  ;;  %v4976_v50 = vadd.f32 %v4975_v46, %v4974_v44  ;;  %v3727_v51 = vpop.f32.mrf.mxu1 }
  0xe1   :  { %v4714_v54 = vmul.f32 %v3727_v51, %v1390_v48  ;;  %v4985_v14 = vsel %vm919_vm1, %v4716_v47, 0.0 }
  0xe2   :  { %v6431_v55 = vpop.f32.mrf.mxu0  ;;  %v4978_v58 = vadd.f32 %v4977_v53, %v4976_v50  ;;  %v6689_v59 = vpop.f32.mrf.mxu1 }
  0xe3   :  { %v4717_v61 = vmul.f32 %v6689_v59, %v6431_v55  ;;  %v4981_v2 = vsel %vm919_vm1, %v4714_v54, 0.0 }
  0xe4   :  { %v1393_v62 = vpop.f32.mrf.mxu0  ;;  %v4980_v0 = vadd.f32 %v4979_v60, %v4978_v58  ;;  %v3730_v1 = vpop.f32.mrf.mxu1 }
  0xe5   :  { %v4715_v3 = vmul.f32 %v3730_v1, %v1393_v62  ;;  %v4987_v20 = vsel %vm919_vm1, %v4717_v61, 0.0 }
  0xe6   :  { %v6434_v4 = vpop.f32.mrf.mxu0  ;;  %6529 = vmatmul.mubr.msk.bf16.gmra.mxu0 %vm919_vm1, %v7054_v49  ;;  %v4982_v5 = vadd.f32 %v4981_v2, %v4980_v0  ;;  %v6692_v6 = vpop.f32.mrf.mxu1  ;;  %6787 = vmatmul.mubr.msk.bf16.gmra.mxu1 %vm919_vm1, %v7055_v52 }
  0xe7   :  { %6532 = vmatprep.mubr.msk.bf16.mxu0 %vm919_vm1, %v7056_v57  ;;  %v4983_v7 = vsel %vm919_vm1, %v4715_v3, 0.0  ;;  %v4720_v8 = vmul.f32 %v6692_v6, %v6434_v4  ;;  %6790 = vmatprep.mubr.msk.bf16.mxu1 %vm919_vm1, %v7057_v63 }
  0xe8   :  { %v1406_v9 = vpop.f32.mrf.mxu0  ;;  %v4984_v11 = vadd.f32 %v4983_v7, %v4982_v5  ;;  %v3743_v12 = vpop.f32.mrf.mxu1 }
  0xe9   :  { %v4718_v15 = vmul.f32 %v3743_v12, %v1406_v9 }
  0xea   :  { %v6435_v16 = vpop.f32.mrf.mxu0  ;;  %v4986_v18 = vadd.f32 %v4985_v14, %v4984_v11  ;;  %v6693_v19 = vpop.f32.mrf.mxu1 }
  0xeb   :  { %v4721_v21 = vmul.f32 %v6693_v19, %v6435_v16  ;;  %v4989_v26 = vsel %vm919_vm1, %v4718_v15, 0.0 }
  0xec   :  { %v1409_v22 = vpop.f32.mrf.mxu0  ;;  %v4988_v24 = vadd.f32 %v4987_v20, %v4986_v18  ;;  %v3746_v25 = vpop.f32.mrf.mxu1 }
  0xed   :  { %v4719_v27 = vmul.f32 %v3746_v25, %v1409_v22 }
  0xee   :  { %v6438_v28 = vpop.f32.mrf.mxu0  ;;  %6533 = vmatmul.mubr.msk.bf16.gmra.mxu0 %vm919_vm1, %v7058_v10  ;;  %v4990_v29 = vadd.f32 %v4989_v26, %v4988_v24  ;;  %v6696_v30 = vpop.f32.mrf.mxu1  ;;  %6791 = vmatmul.mubr.msk.bf16.gmra.mxu1 %vm919_vm1, %v7059_v13 }
  0xef   :  { %6536 = vmatprep.mubr.msk.bf16.mxu0 %vm919_vm1, %v7060_v17 }
  0xf0   :  { %10 = vsyncpa [#allocation3], 0  ;;  %v4991_v31 = vsel %vm919_vm1, %v4719_v27, 0.0  ;;  %v4724_v32 = vmul.f32 %v6696_v30, %v6438_v28  ;;  %v1422_v33 = vpop.f32.mrf.mxu0  ;;  %6794 = vmatprep.mubr.msk.bf16.mxu1 %vm919_vm1, %v7061_v23  ;;  %v3759_v35 = vpop.f32.mrf.mxu1  ;;  %v4993_v36 = vsel %vm919_vm1, %v4720_v8, 0.0  ;;  %v7062_v39 = vld [vmem:[%s8568_s0 + $0x1e8] sm:$0xff]   ;;  %v7064_v43 = vld [vmem:[%s8568_s0 + $0x1f0] sm:$0xff]  }
  0xf1   :  { %v4992_v34 = vadd.f32 %v4991_v31, %v4990_v29  ;;  %v4722_v37 = vmul.f32 %v3759_v35, %v1422_v33  ;;  %v7063_v42 = vld [vmem:[%s8569_s1 + $0x1e8] sm:$0xff]   ;;  %v4995_v44 = vsel %vm919_vm1, %v4721_v21, 0.0  ;;  %v7065_v47 = vld [vmem:[%s8569_s1 + $0x1f0] sm:$0xff]   ;;  %v7066_v0 = vld [vmem:[%s8568_s0 + $0x1f8] sm:$0xff]   ;;  %vm5534_vm3 = vcmask 1041409   ;;  %s7220_s25 = smov [#allocation2]  }
  0xf2   :  { %v6439_v38 = vpop.f32.mrf.mxu0  ;;  %v6697_v41 = vpop.f32.mrf.mxu1  ;;  %v5001_v61 = vsel %vm919_vm1, %v4724_v32, 0.0  ;;  %v7067_v3 = vld [vmem:[%s8569_s1 + $0x1f8] sm:$0xff]   ;;  %v7068_v4 = vld [vmem:[%s8568_s0 + $0x200] sm:$0xff]   ;;  %v7070_v24 = vld [vmem:[%s8568_s0 + $0x208] sm:$0xff]   ;;  %vm5536_vm4 = vcmask 1042434   ;;  %vm5538_vm5 = vcmask 1043459  }
  0xf3   :  { %v4994_v40 = vadd.f32 %v4993_v36, %v4992_v34  ;;  %v4725_v45 = vmul.f32 %v6697_v41, %v6439_v38  ;;  %v4997_v50 = vsel %vm919_vm1, %v4722_v37, 0.0  ;;  %v7069_v8 = vld [vmem:[%s8569_s1 + $0x200] sm:$0xff]   ;;  %v7071_v27 = vld [vmem:[%s8569_s1 + $0x208] sm:$0xff]   ;;  %v7072_v28 = vld [vmem:[%s8568_s0 + $0x210] sm:$0xff]   ;;  %vm5540_vm6 = vcmask 1044484   ;;  %s5631_s2 = sshll.u32 %s7220_s25, 4  ;;  %s5632_s2 = int_to_ptr.vmem [resolvable:$true] %s5631_s2 }
  0xf4   :  { %v1425_v46 = vpop.f32.mrf.mxu0  ;;  %v3762_v49 = vpop.f32.mrf.mxu1  ;;  %v7073_v32 = vld [vmem:[%s8569_s1 + $0x210] sm:$0xff]   ;;  %vm5542_vm7 = vcmask 1045509   ;;  %vm7219_vm8 = vmmov 0   ;;  %vm5544_vm9 = vcmask 1046534   ;;  %vm5546_vm10 = vcmask 1047559   ;;  %s7196_s26 = scalar_lea.vmem %s5632_s2, 128  ;;  %p7201_p1 = scmp.lt.s32.totalorder %s5632_s2, %s5632_s2 }
  0xf5   :  { %v4996_v48 = vadd.f32 %v4995_v44, %v4994_v40  ;;  %v4723_v51 = vmul.f32 %v3762_v49, %v1425_v46  ;;  %v5003_v5 = vsel %vm919_vm1, %v4725_v45, 0.0  ;;  %p7197_p0 = scmp.ne.s32.totalorder %s5632_s2, %s7196_s26  ;;  %p7202_p2 = scmp.lt.s32.totalorder %s7196_s26, %s7196_s26 }
  0xf6   :  { %v6442_v52 = vpop.f32.mrf.mxu0  ;;  %6537 = vmatmul.mubr.msk.bf16.gmra.mxu0 %vm919_vm1, %v7062_v39  ;;  %v6700_v54 = vpop.f32.mrf.mxu1  ;;  %6795 = vmatmul.mubr.msk.bf16.gmra.mxu1 %vm919_vm1, %v7063_v42 }
  0xf7   :  { %v4998_v53 = vadd.f32 %v4997_v50, %v4996_v48  ;;  %6540 = vmatprep.mubr.msk.bf16.mxu0 %vm919_vm1, %v7064_v43  ;;  %v4999_v55 = vsel %vm919_vm1, %v4723_v51, 0.0  ;;  %v4728_v57 = vmul.f32 %v6700_v54, %v6442_v52  ;;  %6798 = vmatprep.mubr.msk.bf16.mxu1 %vm919_vm1, %v7065_v47  ;;  %v7074_v48 = vld [vmem:[%s8568_s0 + $0x218] sm:$0xff]   ;;  %v7076_v52 = vld [vmem:[%s8568_s0 + $0x220] sm:$0xff]   ;;  %p7203_p3 = por %p7202_p2, %p7201_p1 }
  0xf8   :  { %v1438_v58 = vpop.f32.mrf.mxu0  ;;  %v3775_v60 = vpop.f32.mrf.mxu1  ;;  %v7075_v51 = vld [vmem:[%s8569_s1 + $0x218] sm:$0xff]  }
  0xf9   :  { %v5000_v59 = vadd.f32 %v4999_v55, %v4998_v53  ;;  %v4726_v62 = vmul.f32 %v3775_v60, %v1438_v58  ;;  %v5009_v21 = vsel %vm919_vm1, %v4728_v57, 0.0  ;;  %v7077_v57 = vld [vmem:[%s8569_s1 + $0x220] sm:$0xff]   ;;  %p7204_p4 = pnand %p7203_p3, %p7197_p0 }
  0xfa   :  { %v6443_v63 = vpop.f32.mrf.mxu0  ;;  %v6701_v2 = vpop.f32.mrf.mxu1 }
  0xfb   :  { %v5002_v1 = vadd.f32 %v5001_v61, %v5000_v59  ;;  %v4729_v6 = vmul.f32 %v6701_v2, %v6443_v63  ;;  %v5005_v11 = vsel %vm919_vm1, %v4726_v62, 0.0 }
  0xfc   :  { %v1441_v7 = vpop.f32.mrf.mxu0  ;;  %v3778_v10 = vpop.f32.mrf.mxu1 }
  0xfd   :  { %v5004_v9 = vadd.f32 %v5003_v5, %v5002_v1  ;;  %v4727_v12 = vmul.f32 %v3778_v10, %v1441_v7  ;;  %v5011_v29 = vsel %vm919_vm1, %v4729_v6, 0.0 }
  0xfe   :  { %v6446_v13 = vpop.f32.mrf.mxu0  ;;  %6541 = vmatmul.mubr.msk.bf16.gmra.mxu0 %vm919_vm1, %v7066_v0  ;;  %v6704_v15 = vpop.f32.mrf.mxu1  ;;  %6799 = vmatmul.mubr.msk.bf16.gmra.mxu1 %vm919_vm1, %v7067_v3 }
  0xff   :  { %v5006_v14 = vadd.f32 %v5005_v11, %v5004_v9  ;;  %6544 = vmatprep.mubr.msk.bf16.mxu0 %vm919_vm1, %v7068_v4  ;;  %v5007_v16 = vsel %vm919_vm1, %v4727_v12, 0.0  ;;  %v4732_v17 = vmul.f32 %v6704_v15, %v6446_v13  ;;  %6802 = vmatprep.mubr.msk.bf16.mxu1 %vm919_vm1, %v7069_v8  ;;  %v7078_v8 = vld [vmem:[%s8568_s0 + $0x228] sm:$0xff]   ;;  %v7080_v12 = vld [vmem:[%s8568_s0 + $0x230] sm:$0xff]  }
 0x100   :  { %v1454_v18 = vpop.f32.mrf.mxu0  ;;  %v3791_v20 = vpop.f32.mrf.mxu1  ;;  %v7079_v11 = vld [vmem:[%s8569_s1 + $0x228] sm:$0xff]  }
 0x101   :  { %v5008_v19 = vadd.f32 %v5007_v16, %v5006_v14  ;;  %v4730_v22 = vmul.f32 %v3791_v20, %v1454_v18  ;;  %v5017_v45 = vsel %vm919_vm1, %v4732_v17, 0.0  ;;  %v7081_v16 = vld [vmem:[%s8569_s1 + $0x230] sm:$0xff]  }
 0x102   :  { %v6447_v23 = vpop.f32.mrf.mxu0  ;;  %v6705_v26 = vpop.f32.mrf.mxu1 }
 0x103   :  { %v5010_v25 = vadd.f32 %v5009_v21, %v5008_v19  ;;  %v4733_v30 = vmul.f32 %v6705_v26, %v6447_v23  ;;  %v5013_v35 = vsel %vm919_vm1, %v4730_v22, 0.0 }
 0x104   :  { %v1457_v31 = vpop.f32.mrf.mxu0  ;;  %v3794_v34 = vpop.f32.mrf.mxu1 }
 0x105   :  { %v5012_v33 = vadd.f32 %v5011_v29, %v5010_v25  ;;  %v4731_v36 = vmul.f32 %v3794_v34, %v1457_v31  ;;  %v5019_v53 = vsel %vm919_vm1, %v4733_v30, 0.0 }
 0x106   :  { %v6450_v37 = vpop.f32.mrf.mxu0  ;;  %6545 = vmatmul.mubr.msk.bf16.gmra.mxu0 %vm919_vm1, %v7070_v24  ;;  %v6708_v39 = vpop.f32.mrf.mxu1  ;;  %6803 = vmatmul.mubr.msk.bf16.gmra.mxu1 %vm919_vm1, %v7071_v27 }
 0x107   :  { %v5014_v38 = vadd.f32 %v5013_v35, %v5012_v33  ;;  %6548 = vmatprep.mubr.msk.bf16.mxu0 %vm919_vm1, %v7072_v28  ;;  %v5015_v40 = vsel %vm919_vm1, %v4731_v36, 0.0  ;;  %v4736_v41 = vmul.f32 %v6708_v39, %v6450_v37  ;;  %6806 = vmatprep.mubr.msk.bf16.mxu1 %vm919_vm1, %v7073_v32  ;;  %v7082_v32 = vld [vmem:[%s8568_s0 + $0x238] sm:$0xff]   ;;  %v7084_v36 = vld [vmem:[%s8568_s0 + $0x240] sm:$0xff]  }
 0x108   :  { %v1470_v42 = vpop.f32.mrf.mxu0  ;;  %v3807_v44 = vpop.f32.mrf.mxu1  ;;  %v7083_v35 = vld [vmem:[%s8569_s1 + $0x238] sm:$0xff]  }
 0x109   :  { %v5016_v43 = vadd.f32 %v5015_v40, %v5014_v38  ;;  %v4734_v46 = vmul.f32 %v3807_v44, %v1470_v42  ;;  %v5030_v5 = vsel %vm919_vm1, %v4736_v41, 0.0  ;;  %v7085_v40 = vld [vmem:[%s8569_s1 + $0x240] sm:$0xff]  }
 0x10a   :  { %v6451_v47 = vpop.f32.mrf.mxu0  ;;  %v6709_v50 = vpop.f32.mrf.mxu1 }
 0x10b   :  { %v5018_v49 = vadd.f32 %v5017_v45, %v5016_v43  ;;  %v4737_v54 = vmul.f32 %v6709_v50, %v6451_v47  ;;  %v5027_v63 = vsel %vm919_vm1, %v4734_v46, 0.0 }
 0x10c   :  { %v1473_v55 = vpop.f32.mrf.mxu0  ;;  %v3810_v59 = vpop.f32.mrf.mxu1 }
 0x10d   :  { %v7838_v58 = vadd.f32 %v5019_v53, %v5018_v49  ;;  %v4735_v60 = vmul.f32 %v3810_v59, %v1473_v55  ;;  %v5032_v13 = vsel %vm919_vm1, %v4737_v54, 0.0 }
 0x10e   :  { %v6454_v61 = vpop.f32.mrf.mxu0  ;;  %6549 = vmatmul.mubr.msk.bf16.gmra.mxu0 %vm919_vm1, %v7074_v48  ;;  %v6712_v62 = vpop.f32.mrf.mxu1  ;;  %6807 = vmatmul.mubr.msk.bf16.gmra.mxu1 %vm919_vm1, %v7075_v51 }
 0x10f   :  { %6552 = vmatprep.mubr.msk.bf16.mxu0 %vm919_vm1, %v7076_v52  ;;  %v5028_v0 = vsel %vm919_vm1, %v4735_v60, 0.0  ;;  %v4740_v1 = vmul.f32 %v6712_v62, %v6454_v61  ;;  %6810 = vmatprep.mubr.msk.bf16.mxu1 %vm919_vm1, %v7077_v57  ;;  %v7086_v57 = vld [vmem:[%s8568_s0 + $0x248] sm:$0xff]   ;;  %v7088_v62 = vld [vmem:[%s8568_s0 + $0x250] sm:$0xff]  }
 0x110   :  { %v1486_v2 = vpop.f32.mrf.mxu0  ;;  %v5029_v3 = vadd.f32 %v5028_v0, %v5027_v63  ;;  %v3823_v4 = vpop.f32.mrf.mxu1  ;;  %v7087_v61 = vld [vmem:[%s8569_s1 + $0x248] sm:$0xff]  }
 0x111   :  { %v4738_v6 = vmul.f32 %v3823_v4, %v1486_v2  ;;  %v5038_v29 = vsel %vm919_vm1, %v4740_v1, 0.0  ;;  %v7089_v2 = vld [vmem:[%s8569_s1 + $0x250] sm:$0xff]  }
 0x112   :  { %v6455_v7 = vpop.f32.mrf.mxu0  ;;  %v5031_v9 = vadd.f32 %v5030_v5, %v5029_v3  ;;  %v6713_v10 = vpop.f32.mrf.mxu1 }
 0x113   :  { %v4741_v14 = vmul.f32 %v6713_v10, %v6455_v7  ;;  %v5034_v19 = vsel %vm919_vm1, %v4738_v6, 0.0 }
 0x114   :  { %v1489_v15 = vpop.f32.mrf.mxu0  ;;  %v5033_v17 = vadd.f32 %v5032_v13, %v5031_v9  ;;  %v3826_v18 = vpop.f32.mrf.mxu1 }
 0x115   :  { %v4739_v20 = vmul.f32 %v3826_v18, %v1489_v15  ;;  %v5040_v37 = vsel %vm919_vm1, %v4741_v14, 0.0  ;;  %v7090_v18 = vld [vmem:[%s8568_s0 + $0x258] sm:$0xff]  }
 0x116   :  { %v6458_v21 = vpop.f32.mrf.mxu0  ;;  %6553 = vmatmul.mubr.msk.bf16.gmra.mxu0 %vm919_vm1, %v7078_v8  ;;  %v5035_v22 = vadd.f32 %v5034_v19, %v5033_v17  ;;  %v6716_v23 = vpop.f32.mrf.mxu1  ;;  %6811 = vmatmul.mubr.msk.bf16.gmra.mxu1 %vm919_vm1, %v7079_v11 }
 0x117   :  { %6556 = vmatprep.mubr.msk.bf16.mxu0 %vm919_vm1, %v7080_v12  ;;  %v5036_v24 = vsel %vm919_vm1, %v4739_v20, 0.0  ;;  %v4744_v25 = vmul.f32 %v6716_v23, %v6458_v21  ;;  %6814 = vmatprep.mubr.msk.bf16.mxu1 %vm919_vm1, %v7081_v16  ;;  %v7091_v21 = vld [vmem:[%s8569_s1 + $0x258] sm:$0xff]  }
 0x118   :  { %v1502_v26 = vpop.f32.mrf.mxu0  ;;  %v5037_v27 = vadd.f32 %v5036_v24, %v5035_v22  ;;  %v3839_v28 = vpop.f32.mrf.mxu1  ;;  %v7092_v22 = vld [vmem:[%s8568_s0 + $0x260] sm:$0xff]  }
 0x119   :  { %v4742_v30 = vmul.f32 %v3839_v28, %v1502_v26  ;;  %v5046_v53 = vsel %vm919_vm1, %v4744_v25, 0.0  ;;  %v7093_v26 = vld [vmem:[%s8569_s1 + $0x260] sm:$0xff]  }
 0x11a   :  { %v6459_v31 = vpop.f32.mrf.mxu0  ;;  %v5039_v33 = vadd.f32 %v5038_v29, %v5037_v27  ;;  %v6717_v34 = vpop.f32.mrf.mxu1 }
 0x11b   :  { %v4745_v38 = vmul.f32 %v6717_v34, %v6459_v31  ;;  %v5042_v43 = vsel %vm919_vm1, %v4742_v30, 0.0 }
 0x11c   :  { %v1505_v39 = vpop.f32.mrf.mxu0  ;;  %v5041_v41 = vadd.f32 %v5040_v37, %v5039_v33  ;;  %v3842_v42 = vpop.f32.mrf.mxu1 }
 0x11d   :  { %v4743_v44 = vmul.f32 %v3842_v42, %v1505_v39  ;;  %v5048_v63 = vsel %vm919_vm1, %v4745_v38, 0.0  ;;  %v7094_v42 = vld [vmem:[%s8568_s0 + $0x268] sm:$0xff]  }
 0x11e   :  { %v6462_v45 = vpop.f32.mrf.mxu0  ;;  %6557 = vmatmul.mubr.msk.bf16.gmra.mxu0 %vm919_vm1, %v7082_v32  ;;  %v5043_v46 = vadd.f32 %v5042_v43, %v5041_v41  ;;  %v6720_v47 = vpop.f32.mrf.mxu1  ;;  %6815 = vmatmul.mubr.msk.bf16.gmra.mxu1 %vm919_vm1, %v7083_v35 }
 0x11f   :  { %6560 = vmatprep.mubr.msk.bf16.mxu0 %vm919_vm1, %v7084_v36  ;;  %v5044_v48 = vsel %vm919_vm1, %v4743_v44, 0.0  ;;  %v4748_v49 = vmul.f32 %v6720_v47, %v6462_v45  ;;  %6818 = vmatprep.mubr.msk.bf16.mxu1 %vm919_vm1, %v7085_v40  ;;  %v7095_v45 = vld [vmem:[%s8569_s1 + $0x268] sm:$0xff]  }
 0x120   :  { %v1518_v50 = vpop.f32.mrf.mxu0  ;;  %v5045_v51 = vadd.f32 %v5044_v48, %v5043_v46  ;;  %v3855_v52 = vpop.f32.mrf.mxu1  ;;  %v7096_v46 = vld [vmem:[%s8568_s0 + $0x270] sm:$0xff]  }
 0x121   :  { %v4746_v54 = vmul.f32 %v3855_v52, %v1518_v50  ;;  %v5054_v15 = vsel %vm919_vm1, %v4748_v49, 0.0  ;;  %v7097_v50 = vld [vmem:[%s8569_s1 + $0x270] sm:$0xff]  }
 0x122   :  { %v6463_v55 = vpop.f32.mrf.mxu0  ;;  %v5047_v59 = vadd.f32 %v5046_v53, %v5045_v51  ;;  %v6721_v60 = vpop.f32.mrf.mxu1 }
 0x123   :  { %v4749_v0 = vmul.f32 %v6721_v60, %v6463_v55  ;;  %v5050_v5 = vsel %vm919_vm1, %v4746_v54, 0.0 }
 0x124   :  { %v1521_v1 = vpop.f32.mrf.mxu0  ;;  %v5049_v3 = vadd.f32 %v5048_v63, %v5047_v59  ;;  %v3858_v4 = vpop.f32.mrf.mxu1 }
 0x125   :  { %v4747_v6 = vmul.f32 %v3858_v4, %v1521_v1  ;;  %v5056_v23 = vsel %vm919_vm1, %v4749_v0, 0.0  ;;  %v7098_v4 = vld [vmem:[%s8568_s0 + $0x278] sm:$0xff]  }
 0x126   :  { %v6466_v7 = vpop.f32.mrf.mxu0  ;;  %6561 = vmatmul.mubr.msk.bf16.gmra.mxu0 %vm919_vm1, %v7086_v57  ;;  %v5051_v8 = vadd.f32 %v5050_v5, %v5049_v3  ;;  %v6724_v9 = vpop.f32.mrf.mxu1  ;;  %6819 = vmatmul.mubr.msk.bf16.gmra.mxu1 %vm919_vm1, %v7087_v61 }
 0x127   :  { %6564 = vmatprep.mubr.msk.bf16.mxu0 %vm919_vm1, %v7088_v62  ;;  %v5052_v10 = vsel %vm919_vm1, %v4747_v6, 0.0  ;;  %v4752_v11 = vmul.f32 %v6724_v9, %v6466_v7  ;;  %6822 = vmatprep.mubr.msk.bf16.mxu1 %vm919_vm1, %v7089_v2  ;;  %v7099_v7 = vld [vmem:[%s8569_s1 + $0x278] sm:$0xff]  }
 0x128   :  { %v1534_v12 = vpop.f32.mrf.mxu0  ;;  %v5053_v13 = vadd.f32 %v5052_v10, %v5051_v8  ;;  %v3871_v14 = vpop.f32.mrf.mxu1  ;;  %v7100_v8 = vld [vmem:[%s8568_s0 + $0x280] sm:$0xff]  }
 0x129   :  { %v4750_v16 = vmul.f32 %v3871_v14, %v1534_v12  ;;  %v5062_v39 = vsel %vm919_vm1, %v4752_v11, 0.0  ;;  %v7101_v12 = vld [vmem:[%s8569_s1 + $0x280] sm:$0xff]  }
 0x12a   :  { %v6467_v17 = vpop.f32.mrf.mxu0  ;;  %v5055_v19 = vadd.f32 %v5054_v15, %v5053_v13  ;;  %v6725_v20 = vpop.f32.mrf.mxu1 }
 0x12b   :  { %v4753_v24 = vmul.f32 %v6725_v20, %v6467_v17  ;;  %v5058_v29 = vsel %vm919_vm1, %v4750_v16, 0.0 }
 0x12c   :  { %v1537_v25 = vpop.f32.mrf.mxu0  ;;  %v5057_v27 = vadd.f32 %v5056_v23, %v5055_v19  ;;  %v3874_v28 = vpop.f32.mrf.mxu1 }
 0x12d   :  { %v4751_v30 = vmul.f32 %v3874_v28, %v1537_v25  ;;  %v5064_v47 = vsel %vm919_vm1, %v4753_v24, 0.0  ;;  %v7102_v28 = vld [vmem:[%s8568_s0 + $0x288] sm:$0xff]  }
 0x12e   :  { %v6470_v31 = vpop.f32.mrf.mxu0  ;;  %6565 = vmatmul.mubr.msk.bf16.gmra.mxu0 %vm919_vm1, %v7090_v18  ;;  %v5059_v32 = vadd.f32 %v5058_v29, %v5057_v27  ;;  %v6728_v33 = vpop.f32.mrf.mxu1  ;;  %6823 = vmatmul.mubr.msk.bf16.gmra.mxu1 %vm919_vm1, %v7091_v21  ;;  %v5021_v29 = vrot.slane %v7838_v58, 4 }
 0x12f   :  { %6568 = vmatprep.mubr.msk.bf16.mxu0 %vm919_vm1, %v7092_v22  ;;  %v5060_v34 = vsel %vm919_vm1, %v4751_v30, 0.0  ;;  %v4756_v35 = vmul.f32 %v6728_v33, %v6470_v31  ;;  %6826 = vmatprep.mubr.msk.bf16.mxu1 %vm919_vm1, %v7093_v26  ;;  %v7104_v33 = vld [vmem:[%s8568_s0 + $0x290] sm:$0xff]  }
 0x130   :  { %v1550_v36 = vpop.f32.mrf.mxu0  ;;  %v5061_v37 = vadd.f32 %v5060_v34, %v5059_v32  ;;  %v3887_v38 = vpop.f32.mrf.mxu1  ;;  %v7103_v32 = vld [vmem:[%s8569_s1 + $0x288] sm:$0xff]  }
 0x131   :  { %v4754_v40 = vmul.f32 %v3887_v38, %v1550_v36  ;;  %v5070_v1 = vsel %vm919_vm1, %v4756_v35, 0.0 }
 0x132   :  { %v6471_v41 = vpop.f32.mrf.mxu0  ;;  %v5063_v43 = vadd.f32 %v5062_v39, %v5061_v37  ;;  %v6729_v44 = vpop.f32.mrf.mxu1  ;;  %v7105_v37 = vld [vmem:[%s8569_s1 + $0x290] sm:$0xff]  }
 0x133   :  { %v4757_v48 = vmul.f32 %v6729_v44, %v6471_v41  ;;  %v5066_v53 = vsel %vm919_vm1, %v4754_v40, 0.0 }
 0x134   :  { %v1553_v49 = vpop.f32.mrf.mxu0  ;;  %v5065_v51 = vadd.f32 %v5064_v47, %v5063_v43  ;;  %v3890_v52 = vpop.f32.mrf.mxu1  ;;  %v5022_v43 = vadd.f32 %v5021_v29, %v7838_v58  ;;  %v7106_v58 = vld [vmem:[%s8568_s0 + $0x298] sm:$0xff]  }
 0x135   :  { %v4755_v54 = vmul.f32 %v3890_v52, %v1553_v49  ;;  %v5072_v9 = vsel %vm919_vm1, %v4757_v48, 0.0 }
 0x136   :  { %v6474_v55 = vpop.f32.mrf.mxu0  ;;  %6569 = vmatmul.mubr.msk.bf16.gmra.mxu0 %vm919_vm1, %v7094_v42  ;;  %v5067_v57 = vadd.f32 %v5066_v53, %v5065_v51  ;;  %v6732_v59 = vpop.f32.mrf.mxu1  ;;  %6827 = vmatmul.mubr.msk.bf16.gmra.mxu1 %vm919_vm1, %v7095_v45 }
 0x137   :  { %6572 = vmatprep.mubr.msk.bf16.mxu0 %vm919_vm1, %v7096_v46  ;;  %v5068_v60 = vsel %vm919_vm1, %v4755_v54, 0.0  ;;  %v4760_v61 = vmul.f32 %v6732_v59, %v6474_v55  ;;  %6830 = vmatprep.mubr.msk.bf16.mxu1 %vm919_vm1, %v7097_v50  ;;  %v5023_v54 = vrot.slane %v5022_v43, 2  ;;  %v7107_v59 = vld [vmem:[%s8569_s1 + $0x298] sm:$0xff]  }
 0x138   :  { %v1566_v62 = vpop.f32.mrf.mxu0  ;;  %v5069_v63 = vadd.f32 %v5068_v60, %v5067_v57  ;;  %v3903_v0 = vpop.f32.mrf.mxu1  ;;  %v7108_v60 = vld [vmem:[%s8568_s0 + $0x2a0] sm:$0xff]  }
 0x139   :  { %v4758_v2 = vmul.f32 %v3903_v0, %v1566_v62  ;;  %v5078_v25 = vsel %vm919_vm1, %v4760_v61, 0.0  ;;  %v7109_v0 = vld [vmem:[%s8569_s1 + $0x2a0] sm:$0xff]  }
 0x13a   :  { %v6475_v3 = vpop.f32.mrf.mxu0  ;;  %v5071_v5 = vadd.f32 %v5070_v1, %v5069_v63  ;;  %v6733_v6 = vpop.f32.mrf.mxu1 }
 0x13b   :  { %v4761_v10 = vmul.f32 %v6733_v6, %v6475_v3  ;;  %v5074_v15 = vsel %vm919_vm1, %v4758_v2, 0.0 }
 0x13c   :  { %v1569_v11 = vpop.f32.mrf.mxu0  ;;  %v5073_v13 = vadd.f32 %v5072_v9, %v5071_v5  ;;  %v3906_v14 = vpop.f32.mrf.mxu1  ;;  %v5024_v5 = vadd.f32 %v5023_v54, %v5022_v43 }
 0x13d   :  { %v4759_v16 = vmul.f32 %v3906_v14, %v1569_v11  ;;  %v5080_v34 = vsel %vm919_vm1, %v4761_v10, 0.0 }
 0x13e   :  { %v6478_v17 = vpop.f32.mrf.mxu0  ;;  %6573 = vmatmul.mubr.msk.bf16.gmra.mxu0 %vm919_vm1, %v7098_v4  ;;  %v5075_v18 = vadd.f32 %v5074_v15, %v5073_v13  ;;  %v6736_v19 = vpop.f32.mrf.mxu1  ;;  %6831 = vmatmul.mubr.msk.bf16.gmra.mxu1 %vm919_vm1, %v7099_v7 }
 0x13f   :  { %6576 = vmatprep.mubr.msk.bf16.mxu0 %vm919_vm1, %v7100_v8  ;;  %v5076_v20 = vsel %vm919_vm1, %v4759_v16, 0.0  ;;  %v4764_v21 = vmul.f32 %v6736_v19, %v6478_v17  ;;  %6834 = vmatprep.mubr.msk.bf16.mxu1 %vm919_vm1, %v7101_v12  ;;  %v5025_v19 = vrot.slane %v5024_v5, 1 }
 0x140   :  { %v1582_v22 = vpop.f32.mrf.mxu0  ;;  %v5077_v23 = vadd.f32 %v5076_v20, %v5075_v18  ;;  %v3919_v24 = vpop.f32.mrf.mxu1  ;;  %v7110_v18 = vld [vmem:[%s8568_s0 + $0x2a8] sm:$0xff]  }
 0x141   :  { %v4762_v26 = vmul.f32 %v3919_v24, %v1582_v22  ;;  %v5086_v51 = vsel %vm919_vm1, %v4764_v21, 0.0  ;;  %v7112_v24 = vld [vmem:[%s8568_s0 + $0x2b0] sm:$0xff]  }
 0x142   :  { %v6479_v27 = vpop.f32.mrf.mxu0  ;;  %v5079_v30 = vadd.f32 %v5078_v25, %v5077_v23  ;;  %v6737_v31 = vpop.f32.mrf.mxu1  ;;  %v7111_v23 = vld [vmem:[%s8569_s1 + $0x2a8] sm:$0xff]  }
 0x143   :  { %v4765_v35 = vmul.f32 %v6737_v31, %v6479_v27  ;;  %v5082_v40 = vsel %vm919_vm1, %v4762_v26, 0.0 }
 0x144   :  { %v1585_v36 = vpop.f32.mrf.mxu0  ;;  %v5081_v38 = vadd.f32 %v5080_v34, %v5079_v30  ;;  %v3922_v39 = vpop.f32.mrf.mxu1 }
 0x145   :  { %v4763_v41 = vmul.f32 %v3922_v39, %v1585_v36  ;;  %v5088_v61 = vsel %vm919_vm1, %v4765_v35, 0.0  ;;  %v5026_v35 = vadd.f32 %v5025_v19, %v5024_v5 }
 0x146   :  { %v6482_v42 = vpop.f32.mrf.mxu0  ;;  %6577 = vmatmul.mubr.msk.bf16.gmra.mxu0 %vm919_vm1, %v7102_v28  ;;  %v5083_v44 = vadd.f32 %v5082_v40, %v5081_v38  ;;  %v6740_v45 = vpop.f32.mrf.mxu1  ;;  %6835 = vmatmul.mubr.msk.bf16.gmra.mxu1 %vm919_vm1, %v7103_v32  ;;  %v7113_v28 = vld [vmem:[%s8569_s1 + $0x2b0] sm:$0xff]  }
 0x147   :  { %6580 = vmatprep.mubr.msk.bf16.mxu0 %vm919_vm1, %v7104_v33  ;;  %v5084_v46 = vsel %vm919_vm1, %v4763_v41, 0.0  ;;  %v4768_v47 = vmul.f32 %v6740_v45, %v6482_v42  ;;  %6838 = vmatprep.mubr.msk.bf16.mxu1 %vm919_vm1, %v7105_v37 }
 0x148   :  { %v1598_v48 = vpop.f32.mrf.mxu0  ;;  %v5085_v49 = vadd.f32 %v5084_v46, %v5083_v44  ;;  %v3935_v50 = vpop.f32.mrf.mxu1 }
 0x149   :  { %v4766_v52 = vmul.f32 %v3935_v50, %v1598_v48  ;;  %v5099_v15 = vsel %vm919_vm1, %v4768_v47, 0.0  ;;  %v7114_v48 = vld [vmem:[%s8568_s0 + $0x2b8] sm:$0xff]  }
 0x14a   :  { %v6483_v53 = vpop.f32.mrf.mxu0  ;;  %v5087_v55 = vadd.f32 %v5086_v51, %v5085_v49  ;;  %v6741_v57 = vpop.f32.mrf.mxu1  ;;  %v5510_v49 = vmax.f32 %v5026_v35, 0.0 }
 0x14b   :  { %v4769_v62 = vmul.f32 %v6741_v57, %v6483_v53  ;;  %v5096_v8 = vsel %vm919_vm1, %v4766_v52, 0.0  ;;  %v7115_v53 = vld [vmem:[%s8569_s1 + $0x2b8] sm:$0xff]  }
 0x14c   :  { %v1601_v63 = vpop.f32.mrf.mxu0  ;;  %v5089_v1 = vadd.f32 %v5088_v61, %v5087_v55  ;;  %v3938_v2 = vpop.f32.mrf.mxu1 }
 0x14d   :  { %v4767_v3 = vmul.f32 %v3938_v2, %v1601_v63  ;;  %v5101_v25 = vsel %vm919_vm1, %v4769_v62, 0.0 }
 0x14e   :  { %v6486_v4 = vpop.f32.mrf.mxu0  ;;  %6581 = vmatmul.mubr.msk.bf16.gmra.mxu0 %vm919_vm1, %v7106_v58  ;;  %v5090_v6 = vrot.slane %v5089_v1, 4  ;;  %v6744_v7 = vpop.f32.mrf.mxu1  ;;  %6839 = vmatmul.mubr.msk.bf16.gmra.mxu1 %vm919_vm1, %v7107_v59  ;;  %v7116_v58 = vld [vmem:[%s8568_s0 + $0x2c0] sm:$0xff]  }
 0x14f   :  { %6584 = vmatprep.mubr.msk.bf16.mxu0 %vm919_vm1, %v7108_v60  ;;  %v5097_v9 = vsel %vm919_vm1, %v4767_v3, 0.0  ;;  %v4772_v10 = vmul.f32 %v6744_v7, %v6486_v4  ;;  %6842 = vmatprep.mubr.msk.bf16.mxu1 %vm919_vm1, %v7109_v0  ;;  %v7117_v59 = vld [vmem:[%s8569_s1 + $0x2c0] sm:$0xff]  }
 0x150   :  { %v1614_v11 = vpop.f32.mrf.mxu0  ;;  %v5091_v12 = vadd.f32 %v5090_v6, %v5089_v1  ;;  %v5098_v13 = vadd.f32 %v5097_v9, %v5096_v8  ;;  %v3951_v14 = vpop.f32.mrf.mxu1 }
 0x151   :  { %v4770_v16 = vmul.f32 %v3951_v14, %v1614_v11  ;;  %v5107_v45 = vsel %vm919_vm1, %v4772_v10, 0.0 }
 0x152   :  { %v6487_v17 = vpop.f32.mrf.mxu0  ;;  %v5092_v20 = vrot.slane %v5091_v12, 2  ;;  %v5100_v21 = vadd.f32 %v5099_v15, %v5098_v13  ;;  %v6745_v22 = vpop.f32.mrf.mxu1  ;;  %v7119_v15 = vld [vmem:[%s8569_s1 + $0x2c8] sm:$0xff]  }
 0x153   :  { %v4773_v26 = vmul.f32 %v6745_v22, %v6487_v17  ;;  %v5103_v32 = vsel %vm919_vm1, %v4770_v16, 0.0  ;;  %v7120_v16 = vld [vmem:[%s8568_s0 + $0x2d0] sm:$0xff]  }
 0x154   :  { %v1617_v27 = vpop.f32.mrf.mxu0  ;;  %v5093_v29 = vadd.f32 %v5092_v20, %v5091_v12  ;;  %v5102_v30 = vadd.f32 %v5101_v25, %v5100_v21  ;;  %v3954_v31 = vpop.f32.mrf.mxu1  ;;  %v7118_v12 = vld [vmem:[%s8568_s0 + $0x2c8] sm:$0xff]   ;;  %v7121_v20 = vld [vmem:[%s8569_s1 + $0x2d0] sm:$0xff]  }
 0x155   :  { %v4771_v33 = vmul.f32 %v3954_v31, %v1617_v27  ;;  %v5109_v54 = vsel %vm919_vm1, %v4773_v26, 0.0 }
 0x156   :  { %v6490_v34 = vpop.f32.mrf.mxu0  ;;  %6585 = vmatmul.mubr.msk.bf16.gmra.mxu0 %vm919_vm1, %v7110_v18  ;;  %v5094_v36 = vrot.slane %v5093_v29, 1  ;;  %v5104_v37 = vadd.f32 %v5103_v32, %v5102_v30  ;;  %v6748_v38 = vpop.f32.mrf.mxu1  ;;  %6843 = vmatmul.mubr.msk.bf16.gmra.mxu1 %vm919_vm1, %v7111_v23 }
 0x157   :  { %6588 = vmatprep.mubr.msk.bf16.mxu0 %vm919_vm1, %v7112_v24  ;;  %v5105_v39 = vsel %vm919_vm1, %v4771_v33, 0.0  ;;  %v4776_v40 = vmul.f32 %v6748_v38, %v6490_v34  ;;  %6846 = vmatprep.mubr.msk.bf16.mxu1 %vm919_vm1, %v7113_v28 }
 0x158   :  { %v1630_v41 = vpop.f32.mrf.mxu0  ;;  %v5095_v42 = vadd.f32 %v5094_v36, %v5093_v29  ;;  %v5106_v43 = vadd.f32 %v5105_v39, %v5104_v37  ;;  %v3967_v44 = vpop.f32.mrf.mxu1  ;;  %v7122_v36 = vld [vmem:[%s8568_s0 + $0x2d8] sm:$0xff]  }
 0x159   :  { %v4774_v46 = vmul.f32 %v3967_v44, %v1630_v41  ;;  %v5115_v9 = vsel %vm919_vm1, %v4776_v40, 0.0  ;;  %v7123_v39 = vld [vmem:[%s8569_s1 + $0x2d8] sm:$0xff]   ;;  %v7124_v40 = vld [vmem:[%s8568_s0 + $0x2e0] sm:$0xff]  }
 0x15a   :  { %v6491_v47 = vpop.f32.mrf.mxu0  ;;  %v5511_v50 = vmax.f32 %v5095_v42, 0.0  ;;  %v5108_v51 = vadd.f32 %v5107_v45, %v5106_v43  ;;  %v6749_v52 = vpop.f32.mrf.mxu1  ;;  %v7125_v44 = vld [vmem:[%s8569_s1 + $0x2e0] sm:$0xff]  }
 0x15b   :  { %v4777_v55 = vmul.f32 %v6749_v52, %v6491_v47  ;;  %v5111_v63 = vsel %vm919_vm1, %v4774_v46, 0.0 }
 0x15c   :  { %v1633_v57 = vpop.f32.mrf.mxu0  ;;  %v8042_v60 = vsel %vm5534_vm3, %v5511_v50, %v5510_v49  ;;  %v5110_v61 = vadd.f32 %v5109_v54, %v5108_v51  ;;  %v3970_v62 = vpop.f32.mrf.mxu1 }
 0x15d   :  { %v4775_v0 = vmul.f32 %v3970_v62, %v1633_v57  ;;  %v5117_v17 = vsel %vm919_vm1, %v4777_v55, 0.0  ;;  %v7126_v62 = vld [vmem:[%s8568_s0 + $0x2e8] sm:$0xff]  }
 0x15e   :  { %v6494_v1 = vpop.f32.mrf.mxu0  ;;  %6589 = vmatmul.mubr.msk.bf16.gmra.mxu0 %vm919_vm1, %v7114_v48  ;;  %v5112_v2 = vadd.f32 %v5111_v63, %v5110_v61  ;;  %v6752_v3 = vpop.f32.mrf.mxu1  ;;  %6847 = vmatmul.mubr.msk.bf16.gmra.mxu1 %vm919_vm1, %v7115_v53 }
 0x15f   :  { %6592 = vmatprep.mubr.msk.bf16.mxu0 %vm919_vm1, %v7116_v58  ;;  %v5113_v4 = vsel %vm919_vm1, %v4775_v0, 0.0  ;;  %v4780_v5 = vmul.f32 %v6752_v3, %v6494_v1  ;;  %6850 = vmatprep.mubr.msk.bf16.mxu1 %vm919_vm1, %v7117_v59  ;;  %v7127_v1 = vld [vmem:[%s8569_s1 + $0x2e8] sm:$0xff]  }
 0x160   :  { %v1646_v6 = vpop.f32.mrf.mxu0  ;;  %v5114_v7 = vadd.f32 %v5113_v4, %v5112_v2  ;;  %v3983_v8 = vpop.f32.mrf.mxu1  ;;  %v7128_v2 = vld [vmem:[%s8568_s0 + $0x2f0] sm:$0xff]  }
 0x161   :  { %v4778_v10 = vmul.f32 %v3983_v8, %v1646_v6  ;;  %v5123_v33 = vsel %vm919_vm1, %v4780_v5, 0.0  ;;  %v7129_v6 = vld [vmem:[%s8569_s1 + $0x2f0] sm:$0xff]  }
 0x162   :  { %v6495_v11 = vpop.f32.mrf.mxu0  ;;  %v5116_v13 = vadd.f32 %v5115_v9, %v5114_v7  ;;  %v6753_v14 = vpop.f32.mrf.mxu1 }
 0x163   :  { %v4781_v18 = vmul.f32 %v6753_v14, %v6495_v11  ;;  %v5119_v23 = vsel %vm919_vm1, %v4778_v10, 0.0 }
 0x164   :  { %v1649_v19 = vpop.f32.mrf.mxu0  ;;  %v5118_v21 = vadd.f32 %v5117_v17, %v5116_v13  ;;  %v3986_v22 = vpop.f32.mrf.mxu1 }
 0x165   :  { %v4779_v24 = vmul.f32 %v3986_v22, %v1649_v19  ;;  %v5125_v41 = vsel %vm919_vm1, %v4781_v18, 0.0  ;;  %v7130_v22 = vld [vmem:[%s8568_s0 + $0x2f8] sm:$0xff]  }
 0x166   :  { %v6498_v25 = vpop.f32.mrf.mxu0  ;;  %6593 = vmatmul.mubr.msk.bf16.gmra.mxu0 %vm919_vm1, %v7118_v12  ;;  %v5120_v26 = vadd.f32 %v5119_v23, %v5118_v21  ;;  %v6756_v27 = vpop.f32.mrf.mxu1  ;;  %6851 = vmatmul.mubr.msk.bf16.gmra.mxu1 %vm919_vm1, %v7119_v15 }
 0x167   :  { %6596 = vmatprep.mubr.msk.bf16.mxu0 %vm919_vm1, %v7120_v16  ;;  %v5121_v28 = vsel %vm919_vm1, %v4779_v24, 0.0  ;;  %v4784_v29 = vmul.f32 %v6756_v27, %v6498_v25  ;;  %6854 = vmatprep.mubr.msk.bf16.mxu1 %vm919_vm1, %v7121_v20  ;;  %v7131_v25 = vld [vmem:[%s8569_s1 + $0x2f8] sm:$0xff]  }
 0x168   :  { %v1662_v30 = vpop.f32.mrf.mxu0  ;;  %v5122_v31 = vadd.f32 %v5121_v28, %v5120_v26  ;;  %v3999_v32 = vpop.f32.mrf.mxu1  ;;  %v7132_v26 = vld [vmem:[%s8568_s0 + $0x300] sm:$0xff]  }
 0x169   :  { %v4782_v34 = vmul.f32 %v3999_v32, %v1662_v30  ;;  %v5131_v57 = vsel %vm919_vm1, %v4784_v29, 0.0  ;;  %v7133_v30 = vld [vmem:[%s8569_s1 + $0x300] sm:$0xff]  }
 0x16a   :  { %v6499_v35 = vpop.f32.mrf.mxu0  ;;  %v5124_v37 = vadd.f32 %v5123_v33, %v5122_v31  ;;  %v6757_v38 = vpop.f32.mrf.mxu1 }
 0x16b   :  { %v4785_v42 = vmul.f32 %v6757_v38, %v6499_v35  ;;  %v5127_v47 = vsel %vm919_vm1, %v4782_v34, 0.0 }
 0x16c   :  { %v1665_v43 = vpop.f32.mrf.mxu0  ;;  %v5126_v45 = vadd.f32 %v5125_v41, %v5124_v37  ;;  %v4002_v46 = vpop.f32.mrf.mxu1 }
 0x16d   :  { %v4783_v48 = vmul.f32 %v4002_v46, %v1665_v43  ;;  %v5133_v3 = vsel %vm919_vm1, %v4785_v42, 0.0  ;;  %v7134_v46 = vld [vmem:[%s8568_s0 + $0x308] sm:$0xff]  }
 0x16e   :  { %v6502_v49 = vpop.f32.mrf.mxu0  ;;  %6597 = vmatmul.mubr.msk.bf16.gmra.mxu0 %vm919_vm1, %v7122_v36  ;;  %v5128_v50 = vadd.f32 %v5127_v47, %v5126_v45  ;;  %v6760_v51 = vpop.f32.mrf.mxu1  ;;  %6855 = vmatmul.mubr.msk.bf16.gmra.mxu1 %vm919_vm1, %v7123_v39 }
 0x16f   :  { %6600 = vmatprep.mubr.msk.bf16.mxu0 %vm919_vm1, %v7124_v40  ;;  %v5129_v52 = vsel %vm919_vm1, %v4783_v48, 0.0  ;;  %v4788_v53 = vmul.f32 %v6760_v51, %v6502_v49  ;;  %6858 = vmatprep.mubr.msk.bf16.mxu1 %vm919_vm1, %v7125_v44  ;;  %v7135_v49 = vld [vmem:[%s8569_s1 + $0x308] sm:$0xff]  }
 0x170   :  { %v1678_v58 = vpop.f32.mrf.mxu0  ;;  %v5130_v54 = vadd.f32 %v5129_v52, %v5128_v50  ;;  %v4015_v55 = vpop.f32.mrf.mxu1  ;;  %v7136_v50 = vld [vmem:[%s8568_s0 + $0x310] sm:$0xff]  }
 0x171   :  { %v4786_v59 = vmul.f32 %v4015_v55, %v1678_v58  ;;  %v5139_v19 = vsel %vm919_vm1, %v4788_v53, 0.0  ;;  %v7137_v58 = vld [vmem:[%s8569_s1 + $0x310] sm:$0xff]  }
 0x172   :  { %v6503_v61 = vpop.f32.mrf.mxu0  ;;  %v5132_v63 = vadd.f32 %v5131_v57, %v5130_v54  ;;  %v6761_v0 = vpop.f32.mrf.mxu1 }
 0x173   :  { %v4789_v4 = vmul.f32 %v6761_v0, %v6503_v61  ;;  %v5135_v9 = vsel %vm919_vm1, %v4786_v59, 0.0 }
 0x174   :  { %v1681_v5 = vpop.f32.mrf.mxu0  ;;  %v5134_v7 = vadd.f32 %v5133_v3, %v5132_v63  ;;  %v4018_v8 = vpop.f32.mrf.mxu1 }
 0x175   :  { %v4787_v10 = vmul.f32 %v4018_v8, %v1681_v5  ;;  %v5141_v27 = vsel %vm919_vm1, %v4789_v4, 0.0  ;;  %v7138_v8 = vld [vmem:[%s8568_s0 + $0x318] sm:$0xff]  }
 0x176   :  { %v6506_v11 = vpop.f32.mrf.mxu0  ;;  %6601 = vmatmul.mubr.msk.bf16.gmra.mxu0 %vm919_vm1, %v7126_v62  ;;  %v5136_v12 = vadd.f32 %v5135_v9, %v5134_v7  ;;  %v6764_v13 = vpop.f32.mrf.mxu1  ;;  %6859 = vmatmul.mubr.msk.bf16.gmra.mxu1 %vm919_vm1, %v7127_v1 }
 0x177   :  { %6604 = vmatprep.mubr.msk.bf16.mxu0 %vm919_vm1, %v7128_v2  ;;  %v5137_v14 = vsel %vm919_vm1, %v4787_v10, 0.0  ;;  %v4792_v15 = vmul.f32 %v6764_v13, %v6506_v11  ;;  %6862 = vmatprep.mubr.msk.bf16.mxu1 %vm919_vm1, %v7129_v6  ;;  %v7139_v11 = vld [vmem:[%s8569_s1 + $0x318] sm:$0xff]  }
 0x178   :  { %v1694_v16 = vpop.f32.mrf.mxu0  ;;  %v5138_v17 = vadd.f32 %v5137_v14, %v5136_v12  ;;  %v4031_v18 = vpop.f32.mrf.mxu1  ;;  %v7140_v12 = vld [vmem:[%s8568_s0 + $0x320] sm:$0xff]  }
 0x179   :  { %v4790_v20 = vmul.f32 %v4031_v18, %v1694_v16  ;;  %v5147_v43 = vsel %vm919_vm1, %v4792_v15, 0.0  ;;  %v7141_v16 = vld [vmem:[%s8569_s1 + $0x320] sm:$0xff]  }
 0x17a   :  { %v6507_v21 = vpop.f32.mrf.mxu0  ;;  %v5140_v23 = vadd.f32 %v5139_v19, %v5138_v17  ;;  %v6765_v24 = vpop.f32.mrf.mxu1 }
 0x17b   :  { %v4793_v28 = vmul.f32 %v6765_v24, %v6507_v21  ;;  %v5143_v33 = vsel %vm919_vm1, %v4790_v20, 0.0 }
 0x17c   :  { %v1697_v29 = vpop.f32.mrf.mxu0  ;;  %v5142_v31 = vadd.f32 %v5141_v27, %v5140_v23  ;;  %v4034_v32 = vpop.f32.mrf.mxu1 }
 0x17d   :  { %v4791_v34 = vmul.f32 %v4034_v32, %v1697_v29  ;;  %v5149_v51 = vsel %vm919_vm1, %v4793_v28, 0.0 }
 0x17e   :  { %v6510_v35 = vpop.f32.mrf.mxu0  ;;  %6605 = vmatmul.mubr.msk.bf16.gmra.mxu0 %vm919_vm1, %v7130_v22  ;;  %v5144_v36 = vadd.f32 %v5143_v33, %v5142_v31  ;;  %v6768_v37 = vpop.f32.mrf.mxu1  ;;  %6863 = vmatmul.mubr.msk.bf16.gmra.mxu1 %vm919_vm1, %v7131_v25  ;;  %v7142_v33 = vld [vmem:[%s8568_s0 + $0x328] sm:$0xff]  }
 0x17f   :  { %6608 = vmatprep.mubr.msk.bf16.mxu0 %vm919_vm1, %v7132_v26  ;;  %v5145_v38 = vsel %vm919_vm1, %v4791_v34, 0.0  ;;  %v4796_v39 = vmul.f32 %v6768_v37, %v6510_v35  ;;  %6866 = vmatprep.mubr.msk.bf16.mxu1 %vm919_vm1, %v7133_v30  ;;  %v7143_v37 = vld [vmem:[%s8569_s1 + $0x328] sm:$0xff]  }
 0x180   :  { %v1710_v40 = vpop.f32.mrf.mxu0  ;;  %v5146_v41 = vadd.f32 %v5145_v38, %v5144_v36  ;;  %v4047_v42 = vpop.f32.mrf.mxu1  ;;  %v7144_v38 = vld [vmem:[%s8568_s0 + $0x330] sm:$0xff]  }
 0x181   :  { %v4794_v44 = vmul.f32 %v4047_v42, %v1710_v40  ;;  %v5155_v5 = vsel %vm919_vm1, %v4796_v39, 0.0  ;;  %v7145_v42 = vld [vmem:[%s8569_s1 + $0x330] sm:$0xff]  }
 0x182   :  { %v6511_v45 = vpop.f32.mrf.mxu0  ;;  %v5148_v47 = vadd.f32 %v5147_v43, %v5146_v41  ;;  %v6769_v48 = vpop.f32.mrf.mxu1 }
 0x183   :  { %v4797_v52 = vmul.f32 %v6769_v48, %v6511_v45  ;;  %v5151_v57 = vsel %vm919_vm1, %v4794_v44, 0.0 }
 0x184   :  { %v1713_v53 = vpop.f32.mrf.mxu0  ;;  %v5150_v54 = vadd.f32 %v5149_v51, %v5148_v47  ;;  %v4050_v55 = vpop.f32.mrf.mxu1 }
 0x185   :  { %v4795_v59 = vmul.f32 %v4050_v55, %v1713_v53  ;;  %v5157_v13 = vsel %vm919_vm1, %v4797_v52, 0.0 }
 0x186   :  { %v6514_v61 = vpop.f32.mrf.mxu0  ;;  %6609 = vmatmul.mubr.msk.bf16.gmra.mxu0 %vm919_vm1, %v7134_v46  ;;  %v5152_v62 = vadd.f32 %v5151_v57, %v5150_v54  ;;  %v6772_v63 = vpop.f32.mrf.mxu1  ;;  %6867 = vmatmul.mubr.msk.bf16.gmra.mxu1 %vm919_vm1, %v7135_v49 }
 0x187   :  { %6612 = vmatprep.mubr.msk.bf16.mxu0 %vm919_vm1, %v7136_v50  ;;  %v5153_v0 = vsel %vm919_vm1, %v4795_v59, 0.0  ;;  %v4800_v1 = vmul.f32 %v6772_v63, %v6514_v61  ;;  %6870 = vmatprep.mubr.msk.bf16.mxu1 %vm919_vm1, %v7137_v58  ;;  %v7146_v63 = vld [vmem:[%s8568_s0 + $0x338] sm:$0xff]  }
 0x188   :  { %v1726_v2 = vpop.f32.mrf.mxu0  ;;  %v5154_v3 = vadd.f32 %v5153_v0, %v5152_v62  ;;  %v4063_v4 = vpop.f32.mrf.mxu1 }
 0x189   :  { %v4798_v6 = vmul.f32 %v4063_v4, %v1726_v2  ;;  %v5168_v30 = vsel %vm919_vm1, %v4800_v1, 0.0  ;;  %v7148_v4 = vld [vmem:[%s8568_s0 + $0x340] sm:$0xff]  }
 0x18a   :  { %v6515_v7 = vpop.f32.mrf.mxu0  ;;  %v5156_v9 = vadd.f32 %v5155_v5, %v5154_v3  ;;  %v6773_v10 = vpop.f32.mrf.mxu1  ;;  %v7147_v3 = vld [vmem:[%s8569_s1 + $0x338] sm:$0xff]  }
 0x18b   :  { %v4801_v14 = vmul.f32 %v6773_v10, %v6515_v7  ;;  %v5165_v23 = vsel %vm919_vm1, %v4798_v6, 0.0 }
 0x18c   :  { %v1729_v15 = vpop.f32.mrf.mxu0  ;;  %v5158_v17 = vadd.f32 %v5157_v13, %v5156_v9  ;;  %v4066_v18 = vpop.f32.mrf.mxu1 }
 0x18d   :  { %v4799_v19 = vmul.f32 %v4066_v18, %v1729_v15  ;;  %v5170_v39 = vsel %vm919_vm1, %v4801_v14, 0.0 }
 0x18e   :  { %v6518_v20 = vpop.f32.mrf.mxu0  ;;  %6613 = vmatmul.mubr.msk.bf16.gmra.mxu0 %vm919_vm1, %v7138_v8  ;;  %v5159_v21 = vrot.slane %v5158_v17, 4  ;;  %v6776_v22 = vpop.f32.mrf.mxu1  ;;  %6871 = vmatmul.mubr.msk.bf16.gmra.mxu1 %vm919_vm1, %v7139_v11  ;;  %v7149_v8 = vld [vmem:[%s8569_s1 + $0x340] sm:$0xff]  }
 0x18f   :  { %6616 = vmatprep.mubr.msk.bf16.mxu0 %vm919_vm1, %v7140_v12  ;;  %v5166_v24 = vsel %vm919_vm1, %v4799_v19, 0.0  ;;  %v4804_v25 = vmul.f32 %v6776_v22, %v6518_v20  ;;  %6874 = vmatprep.mubr.msk.bf16.mxu1 %vm919_vm1, %v7141_v16 }
 0x190   :  { %v1742_v26 = vpop.f32.mrf.mxu0  ;;  %v5160_v27 = vadd.f32 %v5159_v21, %v5158_v17  ;;  %v5167_v28 = vadd.f32 %v5166_v24, %v5165_v23  ;;  %v4079_v29 = vpop.f32.mrf.mxu1  ;;  %v7150_v24 = vld [vmem:[%s8568_s0 + $0x348] sm:$0xff]  }
 0x191   :  { %v4802_v31 = vmul.f32 %v4079_v29, %v1742_v26  ;;  %v5176_v59 = vsel %vm919_vm1, %v4804_v25, 0.0 }
 0x192   :  { %v6519_v32 = vpop.f32.mrf.mxu0  ;;  %v5161_v34 = vrot.slane %v5160_v27, 2  ;;  %v5169_v35 = vadd.f32 %v5168_v30, %v5167_v28  ;;  %v6777_v36 = vpop.f32.mrf.mxu1  ;;  %v7152_v28 = vld [vmem:[%s8568_s0 + $0x350] sm:$0xff]  }
 0x193   :  { %v4805_v40 = vmul.f32 %v6777_v36, %v6519_v32  ;;  %v5172_v46 = vsel %vm919_vm1, %v4802_v31, 0.0  ;;  %v7153_v32 = vld [vmem:[%s8569_s1 + $0x350] sm:$0xff]  }
 0x194   :  { %v1745_v41 = vpop.f32.mrf.mxu0  ;;  %v5162_v43 = vadd.f32 %v5161_v34, %v5160_v27  ;;  %v5171_v44 = vadd.f32 %v5170_v39, %v5169_v35  ;;  %v4082_v45 = vpop.f32.mrf.mxu1  ;;  %v7151_v27 = vld [vmem:[%s8569_s1 + $0x348] sm:$0xff]  }
 0x195   :  { %v4803_v47 = vmul.f32 %v4082_v45, %v1745_v41  ;;  %v5178_v5 = vsel %vm919_vm1, %v4805_v40, 0.0 }
 0x196   :  { %v6522_v48 = vpop.f32.mrf.mxu0  ;;  %6617 = vmatmul.mubr.msk.bf16.gmra.mxu0 %vm919_vm1, %v7142_v33  ;;  %v5163_v49 = vrot.slane %v5162_v43, 1  ;;  %v5173_v50 = vadd.f32 %v5172_v46, %v5171_v44  ;;  %v6780_v51 = vpop.f32.mrf.mxu1  ;;  %6875 = vmatmul.mubr.msk.bf16.gmra.mxu1 %vm919_vm1, %v7143_v37 }
 0x197   :  { %6620 = vmatprep.mubr.msk.bf16.mxu0 %vm919_vm1, %v7144_v38  ;;  %v5174_v52 = vsel %vm919_vm1, %v4803_v47, 0.0  ;;  %v4808_v53 = vmul.f32 %v6780_v51, %v6522_v48  ;;  %6878 = vmatprep.mubr.msk.bf16.mxu1 %vm919_vm1, %v7145_v42  ;;  %v7154_v48 = vld [vmem:[%s8568_s0 + $0x358] sm:$0xff]  }
 0x198   :  { %v1758_v58 = vpop.f32.mrf.mxu0  ;;  %v5164_v54 = vadd.f32 %v5163_v49, %v5162_v43  ;;  %v5175_v55 = vadd.f32 %v5174_v52, %v5173_v50  ;;  %v4095_v57 = vpop.f32.mrf.mxu1  ;;  %v7155_v51 = vld [vmem:[%s8569_s1 + $0x358] sm:$0xff]   ;;  %v7156_v52 = vld [vmem:[%s8568_s0 + $0x360] sm:$0xff]  }
 0x199   :  { %v4806_v61 = vmul.f32 %v4095_v57, %v1758_v58  ;;  %v5184_v21 = vsel %vm919_vm1, %v4808_v53, 0.0 }
 0x19a   :  { %v6523_v62 = vpop.f32.mrf.mxu0  ;;  %v5512_v0 = vmax.f32 %v5164_v54, 0.0  ;;  %v5177_v1 = vadd.f32 %v5176_v59, %v5175_v55  ;;  %v6781_v2 = vpop.f32.mrf.mxu1  ;;  %v7157_v55 = vld [vmem:[%s8569_s1 + $0x360] sm:$0xff]  }
 0x19b   :  { %v4809_v6 = vmul.f32 %v6781_v2, %v6523_v62  ;;  %v5180_v12 = vsel %vm919_vm1, %v4806_v61, 0.0 }
 0x19c   :  { %v1761_v7 = vpop.f32.mrf.mxu0  ;;  %v8205_v9 = vsel %vm5536_vm4, %v5512_v0, %v8042_v60  ;;  %v5179_v10 = vadd.f32 %v5178_v5, %v5177_v1  ;;  %v4098_v11 = vpop.f32.mrf.mxu1 }
 0x19d   :  { %v4807_v13 = vmul.f32 %v4098_v11, %v1761_v7  ;;  %v5186_v29 = vsel %vm919_vm1, %v4809_v6, 0.0  ;;  %v7158_v11 = vld [vmem:[%s8568_s0 + $0x368] sm:$0xff]  }
 0x19e   :  { %v6526_v14 = vpop.f32.mrf.mxu0  ;;  %6621 = vmatmul.mubr.msk.bf16.gmra.mxu0 %vm919_vm1, %v7146_v63  ;;  %v5181_v15 = vadd.f32 %v5180_v12, %v5179_v10  ;;  %v6784_v16 = vpop.f32.mrf.mxu1  ;;  %6879 = vmatmul.mubr.msk.bf16.gmra.mxu1 %vm919_vm1, %v7147_v3 }
 0x19f   :  { %6624 = vmatprep.mubr.msk.bf16.mxu0 %vm919_vm1, %v7148_v4  ;;  %v5182_v17 = vsel %vm919_vm1, %v4807_v13, 0.0  ;;  %v4812_v18 = vmul.f32 %v6784_v16, %v6526_v14  ;;  %6882 = vmatprep.mubr.msk.bf16.mxu1 %vm919_vm1, %v7149_v8  ;;  %v7159_v14 = vld [vmem:[%s8569_s1 + $0x368] sm:$0xff]  }
 0x1a0   :  { %v1774_v19 = vpop.f32.mrf.mxu0  ;;  %v5183_v60 = vadd.f32 %v5182_v17, %v5181_v15  ;;  %v4111_v20 = vpop.f32.mrf.mxu1  ;;  %v7160_v15 = vld [vmem:[%s8568_s0 + $0x370] sm:$0xff]  }
 0x1a1   :  { %v4810_v22 = vmul.f32 %v4111_v20, %v1774_v19  ;;  %v5192_v45 = vsel %vm919_vm1, %v4812_v18, 0.0  ;;  %v7161_v19 = vld [vmem:[%s8569_s1 + $0x370] sm:$0xff]  }
 0x1a2   :  { %v6527_v23 = vpop.f32.mrf.mxu0  ;;  %v5185_v25 = vadd.f32 %v5184_v21, %v5183_v60  ;;  %v6785_v26 = vpop.f32.mrf.mxu1 }
 0x1a3   :  { %v4813_v30 = vmul.f32 %v6785_v26, %v6527_v23  ;;  %v5188_v35 = vsel %vm919_vm1, %v4810_v22, 0.0 }
 0x1a4   :  { %v1777_v31 = vpop.f32.mrf.mxu0  ;;  %v5187_v33 = vadd.f32 %v5186_v29, %v5185_v25  ;;  %v4114_v34 = vpop.f32.mrf.mxu1 }
 0x1a5   :  { %v4811_v36 = vmul.f32 %v4114_v34, %v1777_v31  ;;  %v5194_v53 = vsel %vm919_vm1, %v4813_v30, 0.0  ;;  %v7162_v34 = vld [vmem:[%s8568_s0 + $0x378] sm:$0xff]  }
 0x1a6   :  { %v6530_v37 = vpop.f32.mrf.mxu0  ;;  %6625 = vmatmul.mubr.msk.bf16.gmra.mxu0 %vm919_vm1, %v7150_v24  ;;  %v5189_v38 = vadd.f32 %v5188_v35, %v5187_v33  ;;  %v6788_v39 = vpop.f32.mrf.mxu1  ;;  %6883 = vmatmul.mubr.msk.bf16.gmra.mxu1 %vm919_vm1, %v7151_v27 }
 0x1a7   :  { %6628 = vmatprep.mubr.msk.bf16.mxu0 %vm919_vm1, %v7152_v28  ;;  %v5190_v40 = vsel %vm919_vm1, %v4811_v36, 0.0  ;;  %v4816_v41 = vmul.f32 %v6788_v39, %v6530_v37  ;;  %6886 = vmatprep.mubr.msk.bf16.mxu1 %vm919_vm1, %v7153_v32  ;;  %v7163_v37 = vld [vmem:[%s8569_s1 + $0x378] sm:$0xff]  }
 0x1a8   :  { %v1790_v42 = vpop.f32.mrf.mxu0  ;;  %v5191_v43 = vadd.f32 %v5190_v40, %v5189_v38  ;;  %v4127_v44 = vpop.f32.mrf.mxu1  ;;  %v7164_v38 = vld [vmem:[%s8568_s0 + $0x380] sm:$0xff]  }
 0x1a9   :  { %v4814_v46 = vmul.f32 %v4127_v44, %v1790_v42  ;;  %v5200_v7 = vsel %vm919_vm1, %v4816_v41, 0.0  ;;  %v7165_v42 = vld [vmem:[%s8569_s1 + $0x380] sm:$0xff]  }
 0x1aa   :  { %v6531_v47 = vpop.f32.mrf.mxu0  ;;  %v5193_v49 = vadd.f32 %v5192_v45, %v5191_v43  ;;  %v6789_v50 = vpop.f32.mrf.mxu1 }
 0x1ab   :  { %v4817_v58 = vmul.f32 %v6789_v50, %v6531_v47  ;;  %v5196_v61 = vsel %vm919_vm1, %v4814_v46, 0.0 }
 0x1ac   :  { %v1793_v54 = vpop.f32.mrf.mxu0  ;;  %v5195_v57 = vadd.f32 %v5194_v53, %v5193_v49  ;;  %v4130_v59 = vpop.f32.mrf.mxu1 }
 0x1ad   :  { %v4815_v62 = vmul.f32 %v4130_v59, %v1793_v54  ;;  %v5202_v16 = vsel %vm919_vm1, %v4817_v58, 0.0  ;;  %v7166_v59 = vld [vmem:[%s8568_s0 + $0x388] sm:$0xff]  }
 0x1ae   :  { %v6534_v63 = vpop.f32.mrf.mxu0  ;;  %6629 = vmatmul.mubr.msk.bf16.gmra.mxu0 %vm919_vm1, %v7154_v48  ;;  %v5197_v0 = vadd.f32 %v5196_v61, %v5195_v57  ;;  %v6792_v1 = vpop.f32.mrf.mxu1  ;;  %6887 = vmatmul.mubr.msk.bf16.gmra.mxu1 %vm919_vm1, %v7155_v51 }
 0x1af   :  { %6632 = vmatprep.mubr.msk.bf16.mxu0 %vm919_vm1, %v7156_v52  ;;  %v5198_v2 = vsel %vm919_vm1, %v4815_v62, 0.0  ;;  %v4820_v3 = vmul.f32 %v6792_v1, %v6534_v63  ;;  %6890 = vmatprep.mubr.msk.bf16.mxu1 %vm919_vm1, %v7157_v55  ;;  %v7167_v63 = vld [vmem:[%s8569_s1 + $0x388] sm:$0xff]  }
 0x1b0   :  { %v1806_v4 = vpop.f32.mrf.mxu0  ;;  %v5199_v5 = vadd.f32 %v5198_v2, %v5197_v0  ;;  %v4143_v6 = vpop.f32.mrf.mxu1  ;;  %v7168_v0 = vld [vmem:[%s8568_s0 + $0x390] sm:$0xff]  }
 0x1b1   :  { %v4818_v8 = vmul.f32 %v4143_v6, %v1806_v4  ;;  %v5208_v31 = vsel %vm919_vm1, %v4820_v3, 0.0  ;;  %v7169_v4 = vld [vmem:[%s8569_s1 + $0x390] sm:$0xff]  }
 0x1b2   :  { %v6535_v10 = vpop.f32.mrf.mxu0  ;;  %v5201_v12 = vadd.f32 %v5200_v7, %v5199_v5  ;;  %v6793_v13 = vpop.f32.mrf.mxu1 }
 0x1b3   :  { %v4821_v17 = vmul.f32 %v6793_v13, %v6535_v10  ;;  %v5204_v21 = vsel %vm919_vm1, %v4818_v8, 0.0 }
 0x1b4   :  { %v1809_v18 = vpop.f32.mrf.mxu0  ;;  %v5203_v60 = vadd.f32 %v5202_v16, %v5201_v12  ;;  %v4146_v20 = vpop.f32.mrf.mxu1 }
 0x1b5   :  { %v4819_v22 = vmul.f32 %v4146_v20, %v1809_v18  ;;  %v5210_v39 = vsel %vm919_vm1, %v4821_v17, 0.0  ;;  %v7170_v20 = vld [vmem:[%s8568_s0 + $0x398] sm:$0xff]  }
 0x1b6   :  { %v6538_v23 = vpop.f32.mrf.mxu0  ;;  %6633 = vmatmul.mubr.msk.bf16.gmra.mxu0 %vm919_vm1, %v7158_v11  ;;  %v5205_v24 = vadd.f32 %v5204_v21, %v5203_v60  ;;  %v6796_v25 = vpop.f32.mrf.mxu1  ;;  %6891 = vmatmul.mubr.msk.bf16.gmra.mxu1 %vm919_vm1, %v7159_v14 }
 0x1b7   :  { %6636 = vmatprep.mubr.msk.bf16.mxu0 %vm919_vm1, %v7160_v15  ;;  %v5206_v26 = vsel %vm919_vm1, %v4819_v22, 0.0  ;;  %v4824_v27 = vmul.f32 %v6796_v25, %v6538_v23  ;;  %6894 = vmatprep.mubr.msk.bf16.mxu1 %vm919_vm1, %v7161_v19  ;;  %v7171_v23 = vld [vmem:[%s8569_s1 + $0x398] sm:$0xff]  }
 0x1b8   :  { %v1822_v28 = vpop.f32.mrf.mxu0  ;;  %v5207_v29 = vadd.f32 %v5206_v26, %v5205_v24  ;;  %v4159_v30 = vpop.f32.mrf.mxu1  ;;  %v7172_v24 = vld [vmem:[%s8568_s0 + $0x3a0] sm:$0xff]  }
 0x1b9   :  { %v4822_v32 = vmul.f32 %v4159_v30, %v1822_v28  ;;  %v5216_v54 = vsel %vm919_vm1, %v4824_v27, 0.0  ;;  %v7173_v28 = vld [vmem:[%s8569_s1 + $0x3a0] sm:$0xff]  }
 0x1ba   :  { %v6539_v33 = vpop.f32.mrf.mxu0  ;;  %v5209_v35 = vadd.f32 %v5208_v31, %v5207_v29  ;;  %v6797_v36 = vpop.f32.mrf.mxu1 }
 0x1bb   :  { %v4825_v40 = vmul.f32 %v6797_v36, %v6539_v33  ;;  %v5212_v45 = vsel %vm919_vm1, %v4822_v32, 0.0 }
 0x1bc   :  { %v1825_v41 = vpop.f32.mrf.mxu0  ;;  %v5211_v43 = vadd.f32 %v5210_v39, %v5209_v35  ;;  %v4162_v44 = vpop.f32.mrf.mxu1 }
 0x1bd   :  { %v4823_v46 = vmul.f32 %v4162_v44, %v1825_v41  ;;  %v5218_v1 = vsel %vm919_vm1, %v4825_v40, 0.0 }
 0x1be   :  { %v6542_v47 = vpop.f32.mrf.mxu0  ;;  %6637 = vmatmul.mubr.msk.bf16.gmra.mxu0 %vm919_vm1, %v7162_v34  ;;  %v5213_v48 = vadd.f32 %v5212_v45, %v5211_v43  ;;  %v6800_v49 = vpop.f32.mrf.mxu1  ;;  %6895 = vmatmul.mubr.msk.bf16.gmra.mxu1 %vm919_vm1, %v7163_v37  ;;  %v7174_v45 = vld [vmem:[%s8568_s0 + $0x3a8] sm:$0xff]  }
 0x1bf   :  { %6640 = vmatprep.mubr.msk.bf16.mxu0 %vm919_vm1, %v7164_v38  ;;  %v5214_v50 = vsel %vm919_vm1, %v4823_v46, 0.0  ;;  %v4828_v51 = vmul.f32 %v6800_v49, %v6542_v47  ;;  %6898 = vmatprep.mubr.msk.bf16.mxu1 %vm919_vm1, %v7165_v42  ;;  %v7175_v49 = vld [vmem:[%s8569_s1 + $0x3a8] sm:$0xff]  }
 0x1c0   :  { %v1838_v52 = vpop.f32.mrf.mxu0  ;;  %v5215_v53 = vadd.f32 %v5214_v50, %v5213_v48  ;;  %v4175_v58 = vpop.f32.mrf.mxu1  ;;  %v7176_v50 = vld [vmem:[%s8568_s0 + $0x3b0] sm:$0xff]  }
 0x1c1   :  { %v4826_v55 = vmul.f32 %v4175_v58, %v1838_v52  ;;  %v5224_v18 = vsel %vm919_vm1, %v4828_v51, 0.0  ;;  %v7177_v58 = vld [vmem:[%s8569_s1 + $0x3b0] sm:$0xff]  }
 0x1c2   :  { %v6543_v57 = vpop.f32.mrf.mxu0  ;;  %v5217_v61 = vadd.f32 %v5216_v54, %v5215_v53  ;;  %v6801_v62 = vpop.f32.mrf.mxu1 }
 0x1c3   :  { %v4829_v2 = vmul.f32 %v6801_v62, %v6543_v57  ;;  %v5220_v7 = vsel %vm919_vm1, %v4826_v55, 0.0 }
 0x1c4   :  { %v1841_v3 = vpop.f32.mrf.mxu0  ;;  %v5219_v5 = vadd.f32 %v5218_v1, %v5217_v61  ;;  %v4178_v6 = vpop.f32.mrf.mxu1 }
 0x1c5   :  { %v4827_v8 = vmul.f32 %v4178_v6, %v1841_v3  ;;  %v5226_v25 = vsel %vm919_vm1, %v4829_v2, 0.0 }
 0x1c6   :  { %v6546_v10 = vpop.f32.mrf.mxu0  ;;  %6641 = vmatmul.mubr.msk.bf16.gmra.mxu0 %vm919_vm1, %v7166_v59  ;;  %v5221_v11 = vadd.f32 %v5220_v7, %v5219_v5  ;;  %v6804_v12 = vpop.f32.mrf.mxu1  ;;  %6899 = vmatmul.mubr.msk.bf16.gmra.mxu1 %vm919_vm1, %v7167_v63 }
 0x1c7   :  { %6644 = vmatprep.mubr.msk.bf16.mxu0 %vm919_vm1, %v7168_v0  ;;  %v5222_v13 = vsel %vm919_vm1, %v4827_v8, 0.0  ;;  %v4832_v14 = vmul.f32 %v6804_v12, %v6546_v10  ;;  %6902 = vmatprep.mubr.msk.bf16.mxu1 %vm919_vm1, %v7169_v4  ;;  %v7178_v12 = vld [vmem:[%s8568_s0 + $0x3b8] sm:$0xff]  }
 0x1c8   :  { %v1854_v15 = vpop.f32.mrf.mxu0  ;;  %v5223_v16 = vadd.f32 %v5222_v13, %v5221_v11  ;;  %v4191_v17 = vpop.f32.mrf.mxu1 }
 0x1c9   :  { %v4830_v19 = vmul.f32 %v4191_v17, %v1854_v15  ;;  %v5237_v42 = vsel %vm919_vm1, %v4832_v14, 0.0  ;;  %v7180_v17 = vld [vmem:[%s8568_s0 + $0x3c0] sm:$0xff]  }
 0x1ca   :  { %v6547_v60 = vpop.f32.mrf.mxu0  ;;  %v5225_v21 = vadd.f32 %v5224_v18, %v5223_v16  ;;  %v6805_v22 = vpop.f32.mrf.mxu1  ;;  %v7179_v16 = vld [vmem:[%s8569_s1 + $0x3b8] sm:$0xff]  }
 0x1cb   :  { %v4833_v26 = vmul.f32 %v6805_v22, %v6547_v60  ;;  %v5234_v35 = vsel %vm919_vm1, %v4830_v19, 0.0 }
 0x1cc   :  { %v1857_v27 = vpop.f32.mrf.mxu0  ;;  %v5227_v29 = vadd.f32 %v5226_v25, %v5225_v21  ;;  %v4194_v30 = vpop.f32.mrf.mxu1 }
 0x1cd   :  { %v4831_v31 = vmul.f32 %v4194_v30, %v1857_v27  ;;  %v5239_v51 = vsel %vm919_vm1, %v4833_v26, 0.0 }
 0x1ce   :  { %v6550_v32 = vpop.f32.mrf.mxu0  ;;  %6645 = vmatmul.mubr.msk.bf16.gmra.mxu0 %vm919_vm1, %v7170_v20  ;;  %v5228_v33 = vrot.slane %v5227_v29, 4  ;;  %v6808_v34 = vpop.f32.mrf.mxu1  ;;  %6903 = vmatmul.mubr.msk.bf16.gmra.mxu1 %vm919_vm1, %v7171_v23  ;;  %v7181_v20 = vld [vmem:[%s8569_s1 + $0x3c0] sm:$0xff]  }
 0x1cf   :  { %6648 = vmatprep.mubr.msk.bf16.mxu0 %vm919_vm1, %v7172_v24  ;;  %v5235_v36 = vsel %vm919_vm1, %v4831_v31, 0.0  ;;  %v4836_v37 = vmul.f32 %v6808_v34, %v6550_v32  ;;  %6906 = vmatprep.mubr.msk.bf16.mxu1 %vm919_vm1, %v7173_v28 }
 0x1d0   :  { %v1870_v38 = vpop.f32.mrf.mxu0  ;;  %v5229_v39 = vadd.f32 %v5228_v33, %v5227_v29  ;;  %v5236_v40 = vadd.f32 %v5235_v36, %v5234_v35  ;;  %v4207_v41 = vpop.f32.mrf.mxu1  ;;  %v7182_v36 = vld [vmem:[%s8568_s0 + $0x3c8] sm:$0xff]  }
 0x1d1   :  { %v4834_v43 = vmul.f32 %v4207_v41, %v1870_v38  ;;  %v5245_v8 = vsel %vm919_vm1, %v4836_v37, 0.0 }
 0x1d2   :  { %v6551_v44 = vpop.f32.mrf.mxu0  ;;  %v5230_v46 = vrot.slane %v5229_v39, 2  ;;  %v5238_v47 = vadd.f32 %v5237_v42, %v5236_v40  ;;  %v6809_v48 = vpop.f32.mrf.mxu1  ;;  %v7184_v40 = vld [vmem:[%s8568_s0 + $0x3d0] sm:$0xff]  }
 0x1d3   :  { %v4837_v52 = vmul.f32 %v6809_v48, %v6551_v44  ;;  %v5241_v59 = vsel %vm919_vm1, %v4834_v43, 0.0  ;;  %v7185_v44 = vld [vmem:[%s8569_s1 + $0x3d0] sm:$0xff]  }
 0x1d4   :  { %v1873_v53 = vpop.f32.mrf.mxu0  ;;  %v5231_v54 = vadd.f32 %v5230_v46, %v5229_v39  ;;  %v5240_v55 = vadd.f32 %v5239_v51, %v5238_v47  ;;  %v4210_v57 = vpop.f32.mrf.mxu1  ;;  %v7183_v39 = vld [vmem:[%s8569_s1 + $0x3c8] sm:$0xff]  }
 0x1d5   :  { %v4835_v61 = vmul.f32 %v4210_v57, %v1873_v53  ;;  %v5247_v18 = vsel %vm919_vm1, %v4837_v52, 0.0 }
 0x1d6   :  { %v6554_v62 = vpop.f32.mrf.mxu0  ;;  %6649 = vmatmul.mubr.msk.bf16.gmra.mxu0 %vm919_vm1, %v7174_v45  ;;  %v5232_v63 = vrot.slane %v5231_v54, 1  ;;  %v5242_v0 = vadd.f32 %v5241_v59, %v5240_v55  ;;  %v6812_v1 = vpop.f32.mrf.mxu1  ;;  %6907 = vmatmul.mubr.msk.bf16.gmra.mxu1 %vm919_vm1, %v7175_v49 }
 0x1d7   :  { %6652 = vmatprep.mubr.msk.bf16.mxu0 %vm919_vm1, %v7176_v50  ;;  %v5243_v2 = vsel %vm919_vm1, %v4835_v61, 0.0  ;;  %v4840_v3 = vmul.f32 %v6812_v1, %v6554_v62  ;;  %6910 = vmatprep.mubr.msk.bf16.mxu1 %vm919_vm1, %v7177_v58  ;;  %v7186_v62 = vld [vmem:[%s8568_s0 + $0x3d8] sm:$0xff]  }
 0x1d8   :  { %v1886_v4 = vpop.f32.mrf.mxu0  ;;  %v5233_v5 = vadd.f32 %v5232_v63, %v5231_v54  ;;  %v5244_v6 = vadd.f32 %v5243_v2, %v5242_v0  ;;  %v4223_v7 = vpop.f32.mrf.mxu1  ;;  %v7187_v1 = vld [vmem:[%s8569_s1 + $0x3d8] sm:$0xff]   ;;  %v7188_v2 = vld [vmem:[%s8568_s0 + $0x3e0] sm:$0xff]  }
 0x1d9   :  { %v4838_v10 = vmul.f32 %v4223_v7, %v1886_v4  ;;  %v5253_v33 = vsel %vm919_vm1, %v4840_v3, 0.0 }
 0x1da   :  { %v6555_v11 = vpop.f32.mrf.mxu0  ;;  %v5513_v13 = vmax.f32 %v5233_v5, 0.0  ;;  %v5246_v14 = vadd.f32 %v5245_v8, %v5244_v6  ;;  %v6813_v15 = vpop.f32.mrf.mxu1  ;;  %v7189_v6 = vld [vmem:[%s8569_s1 + $0x3e0] sm:$0xff]  }
 0x1db   :  { %v4841_v19 = vmul.f32 %v6813_v15, %v6555_v11  ;;  %v5249_v24 = vsel %vm919_vm1, %v4838_v10, 0.0 }
 0x1dc   :  { %v1889_v60 = vpop.f32.mrf.mxu0  ;;  %v8368_v21 = vsel %vm5538_vm5, %v5513_v13, %v8205_v9  ;;  %v5248_v22 = vadd.f32 %v5247_v18, %v5246_v14  ;;  %v4226_v23 = vpop.f32.mrf.mxu1 }
 0x1dd   :  { %v4839_v25 = vmul.f32 %v4226_v23, %v1889_v60  ;;  %v5255_v41 = vsel %vm919_vm1, %v4841_v19, 0.0  ;;  %v7190_v23 = vld [vmem:[%s8568_s0 + $0x3e8] sm:$0xff]  }
 0x1de   :  { %v6558_v26 = vpop.f32.mrf.mxu0  ;;  %6653 = vmatmul.mubr.msk.bf16.gmra.mxu0 %vm919_vm1, %v7178_v12  ;;  %v5250_v27 = vadd.f32 %v5249_v24, %v5248_v22  ;;  %v6816_v28 = vpop.f32.mrf.mxu1  ;;  %6911 = vmatmul.mubr.msk.bf16.gmra.mxu1 %vm919_vm1, %v7179_v16 }
 0x1df   :  { %6656 = vmatprep.mubr.msk.bf16.mxu0 %vm919_vm1, %v7180_v17  ;;  %v5251_v29 = vsel %vm919_vm1, %v4839_v25, 0.0  ;;  %v4844_v30 = vmul.f32 %v6816_v28, %v6558_v26  ;;  %6914 = vmatprep.mubr.msk.bf16.mxu1 %vm919_vm1, %v7181_v20  ;;  %v7191_v26 = vld [vmem:[%s8569_s1 + $0x3e8] sm:$0xff]  }
 0x1e0   :  { %v1902_v31 = vpop.f32.mrf.mxu0  ;;  %v5252_v9 = vadd.f32 %v5251_v29, %v5250_v27  ;;  %v4239_v32 = vpop.f32.mrf.mxu1  ;;  %v7192_v27 = vld [vmem:[%s8568_s0 + $0x3f0] sm:$0xff]  }
 0x1e1   :  { %v4842_v34 = vmul.f32 %v4239_v32, %v1902_v31  ;;  %v5261_v57 = vsel %vm919_vm1, %v4844_v30, 0.0  ;;  %v7193_v31 = vld [vmem:[%s8569_s1 + $0x3f0] sm:$0xff]  }
 0x1e2   :  { %v6559_v35 = vpop.f32.mrf.mxu0  ;;  %v5254_v37 = vadd.f32 %v5253_v33, %v5252_v9  ;;  %v6817_v38 = vpop.f32.mrf.mxu1 }
 0x1e3   :  { %v4845_v42 = vmul.f32 %v6817_v38, %v6559_v35  ;;  %v5257_v47 = vsel %vm919_vm1, %v4842_v34, 0.0 }
 0x1e4   :  { %v1905_v43 = vpop.f32.mrf.mxu0  ;;  %v5256_v45 = vadd.f32 %v5255_v41, %v5254_v37  ;;  %v4242_v46 = vpop.f32.mrf.mxu1 }
 0x1e5   :  { %v4843_v48 = vmul.f32 %v4242_v46, %v1905_v43  ;;  %v5263_v3 = vsel %vm919_vm1, %v4845_v42, 0.0  ;;  %v7194_v46 = vld [vmem:[%s8568_s0 + $0x3f8] sm:$0xff]  }
 0x1e6   :  { %v6562_v49 = vpop.f32.mrf.mxu0  ;;  %6657 = vmatmul.mubr.msk.bf16.gmra.mxu0 %vm919_vm1, %v7182_v36  ;;  %v5258_v50 = vadd.f32 %v5257_v47, %v5256_v45  ;;  %v6820_v51 = vpop.f32.mrf.mxu1  ;;  %6915 = vmatmul.mubr.msk.bf16.gmra.mxu1 %vm919_vm1, %v7183_v39 }
 0x1e7   :  { %6660 = vmatprep.mubr.msk.bf16.mxu0 %vm919_vm1, %v7184_v40  ;;  %v5259_v52 = vsel %vm919_vm1, %v4843_v48, 0.0  ;;  %v4848_v53 = vmul.f32 %v6820_v51, %v6562_v49  ;;  %6918 = vmatprep.mubr.msk.bf16.mxu1 %vm919_vm1, %v7185_v44  ;;  %v7195_v49 = vld [vmem:[%s8569_s1 + $0x3f8] sm:$0xff]  }
 0x1e8   :  { %v1918_v58 = vpop.f32.mrf.mxu0  ;;  %v5260_v54 = vadd.f32 %v5259_v52, %v5258_v50  ;;  %v4255_v55 = vpop.f32.mrf.mxu1 }
 0x1e9   :  { %v4846_v59 = vmul.f32 %v4255_v55, %v1918_v58  ;;  %v5269_v60 = vsel %vm919_vm1, %v4848_v53, 0.0 }
 0x1ea   :  { %v6563_v61 = vpop.f32.mrf.mxu0  ;;  %v5262_v63 = vadd.f32 %v5261_v57, %v5260_v54  ;;  %v6821_v0 = vpop.f32.mrf.mxu1 }
 0x1eb   :  { %v4849_v4 = vmul.f32 %v6821_v0, %v6563_v61  ;;  %v5265_v10 = vsel %vm919_vm1, %v4846_v59, 0.0 }
 0x1ec   :  { %v1921_v5 = vpop.f32.mrf.mxu0  ;;  %v5264_v7 = vadd.f32 %v5263_v3, %v5262_v63  ;;  %v4258_v8 = vpop.f32.mrf.mxu1 }
 0x1ed   :  { %v4847_v11 = vmul.f32 %v4258_v8, %v1921_v5  ;;  %v5271_v28 = vsel %vm919_vm1, %v4849_v4, 0.0 }
 0x1ee   :  { %v6566_v12 = vpop.f32.mrf.mxu0  ;;  %6661 = vmatmul.mubr.msk.bf16.gmra.mxu0 %vm919_vm1, %v7186_v62  ;;  %v5266_v13 = vadd.f32 %v5265_v10, %v5264_v7  ;;  %v6824_v14 = vpop.f32.mrf.mxu1  ;;  %6919 = vmatmul.mubr.msk.bf16.gmra.mxu1 %vm919_vm1, %v7187_v1 }
 0x1ef   :  { %6664 = vmatprep.mubr.msk.bf16.mxu0 %vm919_vm1, %v7188_v2  ;;  %v5267_v15 = vsel %vm919_vm1, %v4847_v11, 0.0  ;;  %v4852_v16 = vmul.f32 %v6824_v14, %v6566_v12  ;;  %6922 = vmatprep.mubr.msk.bf16.mxu1 %vm919_vm1, %v7189_v6 }
 0x1f0   :  { %v1934_v17 = vpop.f32.mrf.mxu0  ;;  %v5268_v18 = vadd.f32 %v5267_v15, %v5266_v13  ;;  %v4271_v19 = vpop.f32.mrf.mxu1 }
 0x1f1   :  { %v4850_v20 = vmul.f32 %v4271_v19, %v1934_v17  ;;  %v5277_v43 = vsel %vm919_vm1, %v4852_v16, 0.0 }
 0x1f2   :  { %v6567_v22 = vpop.f32.mrf.mxu0  ;;  %v5270_v24 = vadd.f32 %v5269_v60, %v5268_v18  ;;  %v6825_v25 = vpop.f32.mrf.mxu1 }
 0x1f3   :  { %v4853_v29 = vmul.f32 %v6825_v25, %v6567_v22  ;;  %v5273_v33 = vsel %vm919_vm1, %v4850_v20, 0.0 }
 0x1f4   :  { %v1937_v30 = vpop.f32.mrf.mxu0  ;;  %v5272_v9 = vadd.f32 %v5271_v28, %v5270_v24  ;;  %v4274_v32 = vpop.f32.mrf.mxu1 }
 0x1f5   :  { %v4851_v34 = vmul.f32 %v4274_v32, %v1937_v30  ;;  %v5279_v50 = vsel %vm919_vm1, %v4853_v29, 0.0 }
 0x1f6   :  { %v6570_v35 = vpop.f32.mrf.mxu0  ;;  %6665 = vmatmul.mubr.msk.bf16.gmra.mxu0 %vm919_vm1, %v7190_v23  ;;  %v5274_v36 = vadd.f32 %v5273_v33, %v5272_v9  ;;  %v6828_v37 = vpop.f32.mrf.mxu1  ;;  %6923 = vmatmul.mubr.msk.bf16.gmra.mxu1 %vm919_vm1, %v7191_v26 }
 0x1f7   :  { %6668 = vmatprep.mubr.msk.bf16.mxu0 %vm919_vm1, %v7192_v27  ;;  %v5275_v38 = vsel %vm919_vm1, %v4851_v34, 0.0  ;;  %v4856_v39 = vmul.f32 %v6828_v37, %v6570_v35  ;;  %6926 = vmatprep.mubr.msk.bf16.mxu1 %vm919_vm1, %v7193_v31 }
 0x1f8   :  { %v1950_v40 = vpop.f32.mrf.mxu0  ;;  %v5276_v41 = vadd.f32 %v5275_v38, %v5274_v36  ;;  %v4287_v42 = vpop.f32.mrf.mxu1 }
 0x1f9   :  { %v4854_v44 = vmul.f32 %v4287_v42, %v1950_v40  ;;  %v5285_v3 = vsel %vm919_vm1, %v4856_v39, 0.0 }
 0x1fa   :  { %v6571_v45 = vpop.f32.mrf.mxu0  ;;  %v5278_v47 = vadd.f32 %v5277_v43, %v5276_v41  ;;  %v6829_v48 = vpop.f32.mrf.mxu1 }
 0x1fb   :  { %v4857_v51 = vmul.f32 %v6829_v48, %v6571_v45  ;;  %v5281_v54 = vsel %vm919_vm1, %v4854_v44, 0.0 }
 0x1fc   :  { %v1953_v52 = vpop.f32.mrf.mxu0  ;;  %v5280_v53 = vadd.f32 %v5279_v50, %v5278_v47  ;;  %v4290_v58 = vpop.f32.mrf.mxu1 }
 0x1fd   :  { %v4855_v55 = vmul.f32 %v4290_v58, %v1953_v52  ;;  %v5287_v8 = vsel %vm919_vm1, %v4857_v51, 0.0 }
 0x1fe   :  { %v6574_v57 = vpop.f32.mrf.mxu0  ;;  %6669 = vmatmul.mubr.msk.bf16.gmra.mxu0 %vm919_vm1, %v7194_v46  ;;  %v5282_v59 = vadd.f32 %v5281_v54, %v5280_v53  ;;  %v6832_v61 = vpop.f32.mrf.mxu1  ;;  %6927 = vmatmul.mubr.msk.bf16.gmra.mxu1 %vm919_vm1, %v7195_v49 }
 0x1ff   :  { %v5283_v62 = vsel %vm919_vm1, %v4855_v55, 0.0  ;;  %v4860_v63 = vmul.f32 %v6832_v61, %v6574_v57  ;;  %6932 = vmatprep.mubr.msk.f32.mxu0 %vm7219_vm8, %v7218_v56 }
 0x200   :  { %v1966_v0 = vpop.f32.mrf.mxu0  ;;  %v5284_v1 = vadd.f32 %v5283_v62, %v5282_v59  ;;  %v4303_v2 = vpop.f32.mrf.mxu1 }
 0x201   :  { %v4858_v4 = vmul.f32 %v4303_v2, %v1966_v0  ;;  %v5293_v24 = vsel %vm919_vm1, %v4860_v63, 0.0 }
 0x202   :  { %v6575_v5 = vpop.f32.mrf.mxu0  ;;  %v5286_v6 = vadd.f32 %v5285_v3, %v5284_v1  ;;  %v6833_v7 = vpop.f32.mrf.mxu1 }
 0x203   :  { %v4861_v10 = vmul.f32 %v6833_v7, %v6575_v5  ;;  %v5289_v14 = vsel %vm919_vm1, %v4858_v4, 0.0 }
 0x204   :  { %v1969_v11 = vpop.f32.mrf.mxu0  ;;  %v5288_v12 = vadd.f32 %v5287_v8, %v5286_v6  ;;  %v4306_v13 = vpop.f32.mrf.mxu1 }
 0x205   :  { %v4859_v15 = vmul.f32 %v4306_v13, %v1969_v11  ;;  %v5295_v29 = vsel %vm919_vm1, %v4861_v10, 0.0 }
 0x206   :  { %v6578_v16 = vpop.f32.mrf.mxu0  ;;  %v5290_v17 = vadd.f32 %v5289_v14, %v5288_v12  ;;  %v6836_v18 = vpop.f32.mrf.mxu1 }
 0x207   :  { %v5291_v19 = vsel %vm919_vm1, %v4859_v15, 0.0  ;;  %v4864_v60 = vmul.f32 %v6836_v18, %v6578_v16 }
 0x208   :  { %v1982_v20 = vpop.f32.mrf.mxu0  ;;  %v5292_v22 = vadd.f32 %v5291_v19, %v5290_v17  ;;  %v4319_v23 = vpop.f32.mrf.mxu1 }
 0x209   :  { %v4862_v25 = vmul.f32 %v4319_v23, %v1982_v20  ;;  %v5306_v44 = vsel %vm919_vm1, %v4864_v60, 0.0 }
 0x20a   :  { %v6579_v26 = vpop.f32.mrf.mxu0  ;;  %v5294_v27 = vadd.f32 %v5293_v24, %v5292_v22  ;;  %v6837_v28 = vpop.f32.mrf.mxu1 }
 0x20b   :  { %v4865_v30 = vmul.f32 %v6837_v28, %v6579_v26  ;;  %v5303_v37 = vsel %vm919_vm1, %v4862_v25, 0.0 }
 0x20c   :  { %v1985_v31 = vpop.f32.mrf.mxu0  ;;  %v5296_v9 = vadd.f32 %v5295_v29, %v5294_v27  ;;  %v4322_v32 = vpop.f32.mrf.mxu1 }
 0x20d   :  { %v4863_v33 = vmul.f32 %v4322_v32, %v1985_v31  ;;  %v5308_v50 = vsel %vm919_vm1, %v4865_v30, 0.0 }
 0x20e   :  { %v6582_v34 = vpop.f32.mrf.mxu0  ;;  %v5297_v35 = vrot.slane %v5296_v9, 4  ;;  %v6840_v36 = vpop.f32.mrf.mxu1 }
 0x20f   :  { %v5304_v38 = vsel %vm919_vm1, %v4863_v33, 0.0  ;;  %v4868_v39 = vmul.f32 %v6840_v36, %v6582_v34 }
 0x210   :  { %v1998_v40 = vpop.f32.mrf.mxu0  ;;  %v5298_v41 = vadd.f32 %v5297_v35, %v5296_v9  ;;  %v5305_v42 = vadd.f32 %v5304_v38, %v5303_v37  ;;  %v4335_v43 = vpop.f32.mrf.mxu1 }
 0x211   :  { %v4866_v45 = vmul.f32 %v4335_v43, %v1998_v40  ;;  %v5314_v6 = vsel %vm919_vm1, %v4868_v39, 0.0 }
 0x212   :  { %v6583_v46 = vpop.f32.mrf.mxu0  ;;  %v5299_v47 = vrot.slane %v5298_v41, 2  ;;  %v5307_v48 = vadd.f32 %v5306_v44, %v5305_v42  ;;  %v6841_v49 = vpop.f32.mrf.mxu1 }
 0x213   :  { %v4869_v51 = vmul.f32 %v6841_v49, %v6583_v46  ;;  %v5310_v55 = vsel %vm919_vm1, %v4866_v45, 0.0 }
 0x214   :  { %v2001_v52 = vpop.f32.mrf.mxu0  ;;  %v5300_v53 = vadd.f32 %v5299_v47, %v5298_v41  ;;  %v5309_v58 = vadd.f32 %v5308_v50, %v5307_v48  ;;  %v4338_v54 = vpop.f32.mrf.mxu1 }
 0x215   :  { %v4867_v57 = vmul.f32 %v4338_v54, %v2001_v52  ;;  %v5316_v13 = vsel %vm919_vm1, %v4869_v51, 0.0 }
 0x216   :  { %v6586_v59 = vpop.f32.mrf.mxu0  ;;  %v5301_v61 = vrot.slane %v5300_v53, 1  ;;  %v5311_v62 = vadd.f32 %v5310_v55, %v5309_v58  ;;  %v6844_v63 = vpop.f32.mrf.mxu1 }
 0x217   :  { %v5312_v0 = vsel %vm919_vm1, %v4867_v57, 0.0  ;;  %v4872_v1 = vmul.f32 %v6844_v63, %v6586_v59 }
 0x218   :  { %v2014_v2 = vpop.f32.mrf.mxu0  ;;  %v5302_v3 = vadd.f32 %v5301_v61, %v5300_v53  ;;  %v5313_v4 = vadd.f32 %v5312_v0, %v5311_v62  ;;  %v4351_v5 = vpop.f32.mrf.mxu1 }
 0x219   :  { %v4870_v7 = vmul.f32 %v4351_v5, %v2014_v2  ;;  %v5322_v29 = vsel %vm919_vm1, %v4872_v1, 0.0 }
 0x21a   :  { %v6587_v8 = vpop.f32.mrf.mxu0  ;;  %v5514_v10 = vmax.f32 %v5302_v3, 0.0  ;;  %v5315_v11 = vadd.f32 %v5314_v6, %v5313_v4  ;;  %v6845_v12 = vpop.f32.mrf.mxu1 }
 0x21b   :  { %v4873_v14 = vmul.f32 %v6845_v12, %v6587_v8  ;;  %v5318_v19 = vsel %vm919_vm1, %v4870_v7, 0.0 }
 0x21c   :  { %v2017_v15 = vpop.f32.mrf.mxu0  ;;  %v5317_v16 = vadd.f32 %v5316_v13, %v5315_v11  ;;  %v4354_v17 = vpop.f32.mrf.mxu1  ;;  %v8463_v18 = vsel %vm5540_vm6, %v5514_v10, %v8368_v21 }
 0x21d   :  { %v4871_v60 = vmul.f32 %v4354_v17, %v2017_v15  ;;  %v5324_v21 = vsel %vm919_vm1, %v4873_v14, 0.0 }
 0x21e   :  { %v6590_v20 = vpop.f32.mrf.mxu0  ;;  %v5319_v22 = vadd.f32 %v5318_v19, %v5317_v16  ;;  %v6848_v23 = vpop.f32.mrf.mxu1 }
 0x21f   :  { %v5320_v24 = vsel %vm919_vm1, %v4871_v60, 0.0  ;;  %v4876_v25 = vmul.f32 %v6848_v23, %v6590_v20 }
 0x220   :  { %v2030_v26 = vpop.f32.mrf.mxu0  ;;  %v5321_v27 = vadd.f32 %v5320_v24, %v5319_v22  ;;  %v4367_v28 = vpop.f32.mrf.mxu1 }
 0x221   :  { %v4874_v30 = vmul.f32 %v4367_v28, %v2030_v26  ;;  %v5330_v47 = vsel %vm919_vm1, %v4876_v25, 0.0 }
 0x222   :  { %v6591_v31 = vpop.f32.mrf.mxu0  ;;  %v5323_v9 = vadd.f32 %v5322_v29, %v5321_v27  ;;  %v6849_v32 = vpop.f32.mrf.mxu1 }
 0x223   :  { %v4877_v33 = vmul.f32 %v6849_v32, %v6591_v31  ;;  %v5326_v37 = vsel %vm919_vm1, %v4874_v30, 0.0 }
 0x224   :  { %v2033_v34 = vpop.f32.mrf.mxu0  ;;  %v5325_v35 = vadd.f32 %v5324_v21, %v5323_v9  ;;  %v4370_v36 = vpop.f32.mrf.mxu1 }
 0x225   :  { %v4875_v38 = vmul.f32 %v4370_v36, %v2033_v34  ;;  %v5332_v52 = vsel %vm919_vm1, %v4877_v33, 0.0 }
 0x226   :  { %v6594_v39 = vpop.f32.mrf.mxu0  ;;  %v5327_v40 = vadd.f32 %v5326_v37, %v5325_v35  ;;  %v6852_v41 = vpop.f32.mrf.mxu1 }
 0x227   :  { %v5328_v42 = vsel %vm919_vm1, %v4875_v38, 0.0  ;;  %v4880_v43 = vmul.f32 %v6852_v41, %v6594_v39 }
 0x228   :  { %v2046_v44 = vpop.f32.mrf.mxu0  ;;  %v5329_v45 = vadd.f32 %v5328_v42, %v5327_v40  ;;  %v4383_v46 = vpop.f32.mrf.mxu1 }
 0x229   :  { %v4878_v48 = vmul.f32 %v4383_v46, %v2046_v44  ;;  %v5338_v5 = vsel %vm919_vm1, %v4880_v43, 0.0 }
 0x22a   :  { %v6595_v49 = vpop.f32.mrf.mxu0  ;;  %v5331_v50 = vadd.f32 %v5330_v47, %v5329_v45  ;;  %v6853_v51 = vpop.f32.mrf.mxu1 }
 0x22b   :  { %v4881_v53 = vmul.f32 %v6853_v51, %v6595_v49  ;;  %v5334_v57 = vsel %vm919_vm1, %v4878_v48, 0.0 }
 0x22c   :  { %v2049_v58 = vpop.f32.mrf.mxu0  ;;  %v5333_v54 = vadd.f32 %v5332_v52, %v5331_v50  ;;  %v4386_v55 = vpop.f32.mrf.mxu1 }
 0x22d   :  { %v4879_v59 = vmul.f32 %v4386_v55, %v2049_v58  ;;  %v5340_v11 = vsel %vm919_vm1, %v4881_v53, 0.0 }
 0x22e   :  { %v6598_v61 = vpop.f32.mrf.mxu0  ;;  %v5335_v62 = vadd.f32 %v5334_v57, %v5333_v54  ;;  %v6856_v63 = vpop.f32.mrf.mxu1 }
 0x22f   :  { %v5336_v0 = vsel %vm919_vm1, %v4879_v59, 0.0  ;;  %v4884_v1 = vmul.f32 %v6856_v63, %v6598_v61 }
 0x230   :  { %v2062_v2 = vpop.f32.mrf.mxu0  ;;  %v5337_v3 = vadd.f32 %v5336_v0, %v5335_v62  ;;  %v4399_v4 = vpop.f32.mrf.mxu1 }
 0x231   :  { %v4882_v6 = vmul.f32 %v4399_v4, %v2062_v2  ;;  %v5346_v27 = vsel %vm919_vm1, %v4884_v1, 0.0 }
 0x232   :  { %v6599_v7 = vpop.f32.mrf.mxu0  ;;  %v5339_v8 = vadd.f32 %v5338_v5, %v5337_v3  ;;  %v6857_v10 = vpop.f32.mrf.mxu1 }
 0x233   :  { %v4885_v12 = vmul.f32 %v6857_v10, %v6599_v7  ;;  %v5342_v16 = vsel %vm919_vm1, %v4882_v6, 0.0 }
 0x234   :  { %v2065_v13 = vpop.f32.mrf.mxu0  ;;  %v5341_v14 = vadd.f32 %v5340_v11, %v5339_v8  ;;  %v4402_v15 = vpop.f32.mrf.mxu1 }
 0x235   :  { %v4883_v17 = vmul.f32 %v4402_v15, %v2065_v13  ;;  %v5348_v9 = vsel %vm919_vm1, %v4885_v12, 0.0 }
 0x236   :  { %v6602_v19 = vpop.f32.mrf.mxu0  ;;  %v5343_v60 = vadd.f32 %v5342_v16, %v5341_v14  ;;  %v6860_v20 = vpop.f32.mrf.mxu1 }
 0x237   :  { %v5344_v22 = vsel %vm919_vm1, %v4883_v17, 0.0  ;;  %v4888_v23 = vmul.f32 %v6860_v20, %v6602_v19 }
 0x238   :  { %v2078_v24 = vpop.f32.mrf.mxu0  ;;  %v5345_v25 = vadd.f32 %v5344_v22, %v5343_v60  ;;  %v4415_v26 = vpop.f32.mrf.mxu1 }
 0x239   :  { %v4886_v28 = vmul.f32 %v4415_v26, %v2078_v24  ;;  %v5354_v45 = vsel %vm919_vm1, %v4888_v23, 0.0 }
 0x23a   :  { %v6603_v29 = vpop.f32.mrf.mxu0  ;;  %v5347_v30 = vadd.f32 %v5346_v27, %v5345_v25  ;;  %v6861_v31 = vpop.f32.mrf.mxu1 }
 0x23b   :  { %v4889_v32 = vmul.f32 %v6861_v31, %v6603_v29  ;;  %v5350_v35 = vsel %vm919_vm1, %v4886_v28, 0.0 }
 0x23c   :  { %v2081_v21 = vpop.f32.mrf.mxu0  ;;  %v5349_v33 = vadd.f32 %v5348_v9, %v5347_v30  ;;  %v4418_v34 = vpop.f32.mrf.mxu1 }
 0x23d   :  { %v4887_v36 = vmul.f32 %v4418_v34, %v2081_v21  ;;  %v5356_v50 = vsel %vm919_vm1, %v4889_v32, 0.0 }
 0x23e   :  { %v6606_v37 = vpop.f32.mrf.mxu0  ;;  %v5351_v38 = vadd.f32 %v5350_v35, %v5349_v33  ;;  %v6864_v39 = vpop.f32.mrf.mxu1 }
 0x23f   :  { %v5352_v40 = vsel %vm919_vm1, %v4887_v36, 0.0  ;;  %v4892_v41 = vmul.f32 %v6864_v39, %v6606_v37 }
 0x240   :  { %v2094_v42 = vpop.f32.mrf.mxu0  ;;  %v5353_v43 = vadd.f32 %v5352_v40, %v5351_v38  ;;  %v4431_v44 = vpop.f32.mrf.mxu1 }
 0x241   :  { %v4890_v46 = vmul.f32 %v4431_v44, %v2094_v42  ;;  %v5362_v3 = vsel %vm919_vm1, %v4892_v41, 0.0 }
 0x242   :  { %v6607_v47 = vpop.f32.mrf.mxu0  ;;  %v5355_v48 = vadd.f32 %v5354_v45, %v5353_v43  ;;  %v6865_v49 = vpop.f32.mrf.mxu1 }
 0x243   :  { %v4893_v51 = vmul.f32 %v6865_v49, %v6607_v47  ;;  %v5358_v54 = vsel %vm919_vm1, %v4890_v46, 0.0 }
 0x244   :  { %v2097_v52 = vpop.f32.mrf.mxu0  ;;  %v5357_v53 = vadd.f32 %v5356_v50, %v5355_v48  ;;  %v4434_v58 = vpop.f32.mrf.mxu1 }
 0x245   :  { %v4891_v55 = vmul.f32 %v4434_v58, %v2097_v52  ;;  %v5364_v8 = vsel %vm919_vm1, %v4893_v51, 0.0 }
 0x246   :  { %v6610_v57 = vpop.f32.mrf.mxu0  ;;  %v5359_v59 = vadd.f32 %v5358_v54, %v5357_v53  ;;  %v6868_v61 = vpop.f32.mrf.mxu1 }
 0x247   :  { %v5360_v62 = vsel %vm919_vm1, %v4891_v55, 0.0  ;;  %v4896_v63 = vmul.f32 %v6868_v61, %v6610_v57 }
 0x248   :  { %v2110_v0 = vpop.f32.mrf.mxu0  ;;  %v5361_v1 = vadd.f32 %v5360_v62, %v5359_v59  ;;  %v4447_v2 = vpop.f32.mrf.mxu1 }
 0x249   :  { %v4894_v4 = vmul.f32 %v4447_v2, %v2110_v0  ;;  %v5375_v26 = vsel %vm919_vm1, %v4896_v63, 0.0 }
 0x24a   :  { %v6611_v5 = vpop.f32.mrf.mxu0  ;;  %v5363_v6 = vadd.f32 %v5362_v3, %v5361_v1  ;;  %v6869_v7 = vpop.f32.mrf.mxu1 }
 0x24b   :  { %v4897_v10 = vmul.f32 %v6869_v7, %v6611_v5  ;;  %v5372_v19 = vsel %vm919_vm1, %v4894_v4, 0.0 }
 0x24c   :  { %v2113_v11 = vpop.f32.mrf.mxu0  ;;  %v5365_v12 = vadd.f32 %v5364_v8, %v5363_v6  ;;  %v4450_v13 = vpop.f32.mrf.mxu1 }
 0x24d   :  { %v4895_v14 = vmul.f32 %v4450_v13, %v2113_v11  ;;  %v5377_v9 = vsel %vm919_vm1, %v4897_v10, 0.0 }
 0x24e   :  { %v6614_v15 = vpop.f32.mrf.mxu0  ;;  %v5366_v16 = vrot.slane %v5365_v12, 4  ;;  %v6872_v17 = vpop.f32.mrf.mxu1 }
 0x24f   :  { %v5373_v60 = vsel %vm919_vm1, %v4895_v14, 0.0  ;;  %v4900_v20 = vmul.f32 %v6872_v17, %v6614_v15 }
 0x250   :  { %v2126_v22 = vpop.f32.mrf.mxu0  ;;  %v5367_v23 = vadd.f32 %v5366_v16, %v5365_v12  ;;  %v5374_v24 = vadd.f32 %v5373_v60, %v5372_v19  ;;  %v4463_v25 = vpop.f32.mrf.mxu1 }
 0x251   :  { %v4898_v27 = vmul.f32 %v4463_v25, %v2126_v22  ;;  %v5383_v48 = vsel %vm919_vm1, %v4900_v20, 0.0 }
 0x252   :  { %v6615_v28 = vpop.f32.mrf.mxu0  ;;  %v5368_v29 = vrot.slane %v5367_v23, 2  ;;  %v5376_v30 = vadd.f32 %v5375_v26, %v5374_v24  ;;  %v6873_v31 = vpop.f32.mrf.mxu1 }
 0x253   :  { %v4901_v32 = vmul.f32 %v6873_v31, %v6615_v28  ;;  %v5379_v36 = vsel %vm919_vm1, %v4898_v27, 0.0 }
 0x254   :  { %v2129_v21 = vpop.f32.mrf.mxu0  ;;  %v5369_v33 = vadd.f32 %v5368_v29, %v5367_v23  ;;  %v5378_v34 = vadd.f32 %v5377_v9, %v5376_v30  ;;  %v4466_v35 = vpop.f32.mrf.mxu1 }
 0x255   :  { %v4899_v37 = vmul.f32 %v4466_v35, %v2129_v21  ;;  %v5385_v58 = vsel %vm919_vm1, %v4901_v32, 0.0 }
 0x256   :  { %v6618_v38 = vpop.f32.mrf.mxu0  ;;  %v5370_v39 = vrot.slane %v5369_v33, 1  ;;  %v5380_v40 = vadd.f32 %v5379_v36, %v5378_v34  ;;  %v6876_v41 = vpop.f32.mrf.mxu1 }
 0x257   :  { %v5381_v42 = vsel %vm919_vm1, %v4899_v37, 0.0  ;;  %v4904_v43 = vmul.f32 %v6876_v41, %v6618_v38 }
 0x258   :  { %v2142_v44 = vpop.f32.mrf.mxu0  ;;  %v5371_v45 = vadd.f32 %v5370_v39, %v5369_v33  ;;  %v5382_v46 = vadd.f32 %v5381_v42, %v5380_v40  ;;  %v4479_v47 = vpop.f32.mrf.mxu1 }
 0x259   :  { %v4902_v49 = vmul.f32 %v4479_v47, %v2142_v44  ;;  %v5391_v8 = vsel %vm919_vm1, %v4904_v43, 0.0 }
 0x25a   :  { %v6619_v50 = vpop.f32.mrf.mxu0  ;;  %v5515_v51 = vmax.f32 %v5371_v45, 0.0  ;;  %v5384_v52 = vadd.f32 %v5383_v48, %v5382_v46  ;;  %v6877_v53 = vpop.f32.mrf.mxu1 }
 0x25b   :  { %v4905_v54 = vmul.f32 %v6877_v53, %v6619_v50  ;;  %v5387_v62 = vsel %vm919_vm1, %v4902_v49, 0.0 }
 0x25c   :  { %v2145_v55 = vpop.f32.mrf.mxu0  ;;  %v5386_v57 = vadd.f32 %v5385_v58, %v5384_v52  ;;  %v4482_v59 = vpop.f32.mrf.mxu1  ;;  %v8499_v61 = vsel %vm5542_vm7, %v5515_v51, %v8463_v18 }
 0x25d   :  { %v4903_v63 = vmul.f32 %v4482_v59, %v2145_v55  ;;  %v5393_v18 = vsel %vm919_vm1, %v4905_v54, 0.0 }
 0x25e   :  { %v6622_v0 = vpop.f32.mrf.mxu0  ;;  %v5388_v1 = vadd.f32 %v5387_v62, %v5386_v57  ;;  %v6880_v2 = vpop.f32.mrf.mxu1 }
 0x25f   :  { %v5389_v3 = vsel %vm919_vm1, %v4903_v63, 0.0  ;;  %v4908_v4 = vmul.f32 %v6880_v2, %v6622_v0 }
 0x260   :  { %v2158_v5 = vpop.f32.mrf.mxu0  ;;  %v5390_v6 = vadd.f32 %v5389_v3, %v5388_v1  ;;  %v4495_v7 = vpop.f32.mrf.mxu1 }
 0x261   :  { %v4906_v56 = vmul.f32 %v4495_v7, %v2158_v5  ;;  %v5399_v28 = vsel %vm919_vm1, %v4908_v4, 0.0 }
 0x262   :  { %v6623_v10 = vpop.f32.mrf.mxu0  ;;  %v5392_v11 = vadd.f32 %v5391_v8, %v5390_v6  ;;  %v6881_v12 = vpop.f32.mrf.mxu1 }
 0x263   :  { %v4909_v13 = vmul.f32 %v6881_v12, %v6623_v10  ;;  %v5395_v17 = vsel %vm919_vm1, %v4906_v56, 0.0 }
 0x264   :  { %v2161_v14 = vpop.f32.mrf.mxu0  ;;  %v5394_v15 = vadd.f32 %v5393_v18, %v5392_v11  ;;  %v4498_v16 = vpop.f32.mrf.mxu1 }
 0x265   :  { %v4907_v19 = vmul.f32 %v4498_v16, %v2161_v14  ;;  %v5401_v32 = vsel %vm919_vm1, %v4909_v13, 0.0 }
 0x266   :  { %v6626_v60 = vpop.f32.mrf.mxu0  ;;  %v5396_v20 = vadd.f32 %v5395_v17, %v5394_v15  ;;  %v6884_v22 = vpop.f32.mrf.mxu1 }
 0x267   :  { %v5397_v23 = vsel %vm919_vm1, %v4907_v19, 0.0  ;;  %v4912_v24 = vmul.f32 %v6884_v22, %v6626_v60 }
 0x268   :  { %v2174_v25 = vpop.f32.mrf.mxu0  ;;  %v5398_v26 = vadd.f32 %v5397_v23, %v5396_v20  ;;  %v4511_v27 = vpop.f32.mrf.mxu1 }
 0x269   :  { %v4910_v29 = vmul.f32 %v4511_v27, %v2174_v25  ;;  %v5407_v46 = vsel %vm919_vm1, %v4912_v24, 0.0 }
 0x26a   :  { %v6627_v30 = vpop.f32.mrf.mxu0  ;;  %v5400_v31 = vadd.f32 %v5399_v28, %v5398_v26  ;;  %v6885_v9 = vpop.f32.mrf.mxu1 }
 0x26b   :  { %v4913_v21 = vmul.f32 %v6885_v9, %v6627_v30  ;;  %v5403_v36 = vsel %vm919_vm1, %v4910_v29, 0.0 }
 0x26c   :  { %v2177_v33 = vpop.f32.mrf.mxu0  ;;  %v5402_v34 = vadd.f32 %v5401_v32, %v5400_v31  ;;  %v4514_v35 = vpop.f32.mrf.mxu1 }
 0x26d   :  { %v4911_v37 = vmul.f32 %v4514_v35, %v2177_v33  ;;  %v5409_v51 = vsel %vm919_vm1, %v4913_v21, 0.0 }
 0x26e   :  { %v6630_v38 = vpop.f32.mrf.mxu0  ;;  %v5404_v39 = vadd.f32 %v5403_v36, %v5402_v34  ;;  %v6888_v40 = vpop.f32.mrf.mxu1 }
 0x26f   :  { %v5405_v41 = vsel %vm919_vm1, %v4911_v37, 0.0  ;;  %v4916_v42 = vmul.f32 %v6888_v40, %v6630_v38 }
 0x270   :  { %v2190_v43 = vpop.f32.mrf.mxu0  ;;  %v5406_v44 = vadd.f32 %v5405_v41, %v5404_v39  ;;  %v4527_v45 = vpop.f32.mrf.mxu1 }
 0x271   :  { %v4914_v47 = vmul.f32 %v4527_v45, %v2190_v43  ;;  %v5415_v5 = vsel %vm919_vm1, %v4916_v42, 0.0 }
 0x272   :  { %v6631_v48 = vpop.f32.mrf.mxu0  ;;  %v5408_v49 = vadd.f32 %v5407_v46, %v5406_v44  ;;  %v6889_v50 = vpop.f32.mrf.mxu1 }
 0x273   :  { %v4917_v52 = vmul.f32 %v6889_v50, %v6631_v48  ;;  %v5411_v55 = vsel %vm919_vm1, %v4914_v47, 0.0 }
 0x274   :  { %v2193_v53 = vpop.f32.mrf.mxu0  ;;  %v5410_v58 = vadd.f32 %v5409_v51, %v5408_v49  ;;  %v4530_v54 = vpop.f32.mrf.mxu1 }
 0x275   :  { %v4915_v57 = vmul.f32 %v4530_v54, %v2193_v53  ;;  %v5417_v10 = vsel %vm919_vm1, %v4917_v52, 0.0 }
 0x276   :  { %v6634_v59 = vpop.f32.mrf.mxu0  ;;  %v5412_v62 = vadd.f32 %v5411_v55, %v5410_v58  ;;  %v6892_v63 = vpop.f32.mrf.mxu1 }
 0x277   :  { %v5413_v0 = vsel %vm919_vm1, %v4915_v57, 0.0  ;;  %v4920_v1 = vmul.f32 %v6892_v63, %v6634_v59 }
 0x278   :  { %v2206_v2 = vpop.f32.mrf.mxu0  ;;  %v5414_v3 = vadd.f32 %v5413_v0, %v5412_v62  ;;  %v4543_v4 = vpop.f32.mrf.mxu1 }
 0x279   :  { %v4918_v6 = vmul.f32 %v4543_v4, %v2206_v2  ;;  %v5423_v25 = vsel %vm919_vm1, %v4920_v1, 0.0 }
 0x27a   :  { %v6635_v7 = vpop.f32.mrf.mxu0  ;;  %v5416_v8 = vadd.f32 %v5415_v5, %v5414_v3  ;;  %v6893_v56 = vpop.f32.mrf.mxu1 }
 0x27b   :  { %v4921_v11 = vmul.f32 %v6893_v56, %v6635_v7  ;;  %v5419_v14 = vsel %vm919_vm1, %v4918_v6, 0.0 }
 0x27c   :  { %v2209_v12 = vpop.f32.mrf.mxu0  ;;  %v5418_v18 = vadd.f32 %v5417_v10, %v5416_v8  ;;  %v4546_v13 = vpop.f32.mrf.mxu1 }
 0x27d   :  { %v4919_v15 = vmul.f32 %v4546_v13, %v2209_v12  ;;  %v5425_v30 = vsel %vm919_vm1, %v4921_v11, 0.0 }
 0x27e   :  { %v6638_v16 = vpop.f32.mrf.mxu0  ;;  %v5420_v17 = vadd.f32 %v5419_v14, %v5418_v18  ;;  %v6896_v19 = vpop.f32.mrf.mxu1 }
 0x27f   :  { %v5421_v60 = vsel %vm919_vm1, %v4919_v15, 0.0  ;;  %v4924_v20 = vmul.f32 %v6896_v19, %v6638_v16 }
 0x280   :  { %v2222_v22 = vpop.f32.mrf.mxu0  ;;  %v5422_v23 = vadd.f32 %v5421_v60, %v5420_v17  ;;  %v4559_v24 = vpop.f32.mrf.mxu1 }
 0x281   :  { %v4922_v26 = vmul.f32 %v4559_v24, %v2222_v22  ;;  %v5431_v42 = vsel %vm919_vm1, %v4924_v20, 0.0 }
 0x282   :  { %v6639_v27 = vpop.f32.mrf.mxu0  ;;  %v5424_v28 = vadd.f32 %v5423_v25, %v5422_v23  ;;  %v6897_v29 = vpop.f32.mrf.mxu1 }
 0x283   :  { %v4925_v31 = vmul.f32 %v6897_v29, %v6639_v27  ;;  %v5427_v33 = vsel %vm919_vm1, %v4922_v26, 0.0 }
 0x284   :  { %v2225_v9 = vpop.f32.mrf.mxu0  ;;  %v5426_v32 = vadd.f32 %v5425_v30, %v5424_v28  ;;  %v4562_v21 = vpop.f32.mrf.mxu1 }
 0x285   :  { %v4923_v34 = vmul.f32 %v4562_v21, %v2225_v9  ;;  %v5433_v46 = vsel %vm919_vm1, %v4925_v31, 0.0 }
 0x286   :  { %v6642_v35 = vpop.f32.mrf.mxu0  ;;  %v5428_v36 = vadd.f32 %v5427_v33, %v5426_v32  ;;  %v6900_v37 = vpop.f32.mrf.mxu1 }
 0x287   :  { %v5429_v38 = vsel %vm919_vm1, %v4923_v34, 0.0  ;;  %v4928_v51 = vmul.f32 %v6900_v37, %v6642_v35 }
 0x288   :  { %v2238_v39 = vpop.f32.mrf.mxu0  ;;  %v5430_v40 = vadd.f32 %v5429_v38, %v5428_v36  ;;  %v4575_v41 = vpop.f32.mrf.mxu1 }
 0x289   :  { %v4926_v47 = vmul.f32 %v4575_v41, %v2238_v39  ;;  %v5444_v2 = vsel %vm919_vm1, %v4928_v51, 0.0 }
 0x28a   :  { %v6643_v43 = vpop.f32.mrf.mxu0  ;;  %v5432_v44 = vadd.f32 %v5431_v42, %v5430_v40  ;;  %v6901_v45 = vpop.f32.mrf.mxu1 }
 0x28b   :  { %v5441_v55 = vsel %vm919_vm1, %v4926_v47, 0.0  ;;  %v4929_v57 = vmul.f32 %v6901_v45, %v6643_v43 }
 0x28c   :  { %v2241_v48 = vpop.f32.mrf.mxu0  ;;  %v5434_v49 = vadd.f32 %v5433_v46, %v5432_v44  ;;  %v4578_v50 = vpop.f32.mrf.mxu1 }
 0x28d   :  { %v4927_v52 = vmul.f32 %v4578_v50, %v2241_v48  ;;  %v5446_v8 = vsel %vm919_vm1, %v4929_v57, 0.0 }
 0x28e   :  { %v6646_v53 = vpop.f32.mrf.mxu0  ;;  %v5435_v58 = vrot.slane %v5434_v49, 4  ;;  %v6904_v54 = vpop.f32.mrf.mxu1 }
 0x28f   :  { %v5442_v59 = vsel %vm919_vm1, %v4927_v52, 0.0  ;;  %v4932_v18 = vmul.f32 %v6904_v54, %v6646_v53 }
 0x290   :  { %v2254_v62 = vpop.f32.mrf.mxu0  ;;  %v5436_v63 = vadd.f32 %v5435_v58, %v5434_v49  ;;  %v5443_v0 = vadd.f32 %v5442_v59, %v5441_v55  ;;  %v4591_v1 = vpop.f32.mrf.mxu1 }
 0x291   :  { %v4930_v3 = vmul.f32 %v4591_v1, %v2254_v62  ;;  %v5452_v26 = vsel %vm919_vm1, %v4932_v18, 0.0 }
 0x292   :  { %v6647_v4 = vpop.f32.mrf.mxu0  ;;  %v5437_v5 = vrot.slane %v5436_v63, 2  ;;  %v5445_v6 = vadd.f32 %v5444_v2, %v5443_v0  ;;  %v6905_v7 = vpop.f32.mrf.mxu1 }
 0x293   :  { %v5448_v13 = vsel %vm919_vm1, %v4930_v3, 0.0  ;;  %v4933_v60 = vmul.f32 %v6905_v7, %v6647_v4 }
 0x294   :  { %v2257_v56 = vpop.f32.mrf.mxu0  ;;  %v5438_v10 = vadd.f32 %v5437_v5, %v5436_v63  ;;  %v5447_v11 = vadd.f32 %v5446_v8, %v5445_v6  ;;  %v4594_v12 = vpop.f32.mrf.mxu1 }
 0x295   :  { %v4931_v14 = vmul.f32 %v4594_v12, %v2257_v56  ;;  %v5454_v9 = vsel %vm919_vm1, %v4933_v60, 0.0 }
 0x296   :  { %v6650_v15 = vpop.f32.mrf.mxu0  ;;  %v5439_v16 = vrot.slane %v5438_v10, 1  ;;  %v5449_v17 = vadd.f32 %v5448_v13, %v5447_v11  ;;  %v6908_v19 = vpop.f32.mrf.mxu1 }
 0x297   :  { %v5450_v20 = vsel %vm919_vm1, %v4931_v14, 0.0  ;;  %v4936_v35 = vmul.f32 %v6908_v19, %v6650_v15 }
 0x298   :  { %v2270_v22 = vpop.f32.mrf.mxu0  ;;  %v5440_v23 = vadd.f32 %v5439_v16, %v5438_v10  ;;  %v5451_v24 = vadd.f32 %v5450_v20, %v5449_v17  ;;  %v4607_v25 = vpop.f32.mrf.mxu1 }
 0x299   :  { %v4934_v27 = vmul.f32 %v4607_v25, %v2270_v22  ;;  %v5460_v46 = vsel %vm919_vm1, %v4936_v35, 0.0 }
 0x29a   :  { %v6651_v28 = vpop.f32.mrf.mxu0  ;;  %v5516_v29 = vmax.f32 %v5440_v23, 0.0  ;;  %v5453_v30 = vadd.f32 %v5452_v26, %v5451_v24  ;;  %v6909_v31 = vpop.f32.mrf.mxu1 }
 0x29b   :  { %v5456_v36 = vsel %vm919_vm1, %v4934_v27, 0.0  ;;  %v4937_v41 = vmul.f32 %v6909_v31, %v6651_v28 }
 0x29c   :  { %v2273_v32 = vpop.f32.mrf.mxu0  ;;  %v5455_v21 = vadd.f32 %v5454_v9, %v5453_v30  ;;  %v4610_v33 = vpop.f32.mrf.mxu1  ;;  %v8534_v34 = vsel %vm5544_vm9, %v5516_v29, %v8499_v61 }
 0x29d   :  { %v4935_v37 = vmul.f32 %v4610_v33, %v2273_v32  ;;  %v5462_v50 = vsel %vm919_vm1, %v4937_v41, 0.0 }
 0x29e   :  { %v6654_v38 = vpop.f32.mrf.mxu0  ;;  %v5457_v39 = vadd.f32 %v5456_v36, %v5455_v21  ;;  %v6912_v40 = vpop.f32.mrf.mxu1 }
 0x29f   :  { %v5458_v42 = vsel %vm919_vm1, %v4935_v37, 0.0  ;;  %v4940_v58 = vmul.f32 %v6912_v40, %v6654_v38 }
 0x2a0   :  { %v2286_v43 = vpop.f32.mrf.mxu0  ;;  %v5459_v44 = vadd.f32 %v5458_v42, %v5457_v39  ;;  %v4623_v45 = vpop.f32.mrf.mxu1 }
 0x2a1   :  { %v4938_v47 = vmul.f32 %v4623_v45, %v2286_v43  ;;  %v5468_v4 = vsel %vm919_vm1, %v4940_v58, 0.0 }
 0x2a2   :  { %v6655_v48 = vpop.f32.mrf.mxu0  ;;  %v5461_v49 = vadd.f32 %v5460_v46, %v5459_v44  ;;  %v6913_v61 = vpop.f32.mrf.mxu1 }
 0x2a3   :  { %v5464_v54 = vsel %vm919_vm1, %v4938_v47, 0.0  ;;  %v4941_v63 = vmul.f32 %v6913_v61, %v6655_v48 }
 0x2a4   :  { %v2289_v51 = vpop.f32.mrf.mxu0  ;;  %v5463_v52 = vadd.f32 %v5462_v50, %v5461_v49  ;;  %v4626_v53 = vpop.f32.mrf.mxu1 }
 0x2a5   :  { %v4939_v55 = vmul.f32 %v4626_v53, %v2289_v51  ;;  %v5470_v56 = vsel %vm919_vm1, %v4941_v63, 0.0 }
 0x2a6   :  { %v6658_v57 = vpop.f32.mrf.mxu0  ;;  %v5465_v59 = vadd.f32 %v5464_v54, %v5463_v52  ;;  %v6916_v62 = vpop.f32.mrf.mxu1 }
 0x2a7   :  { %v5466_v0 = vsel %vm919_vm1, %v4939_v55, 0.0  ;;  %v4944_v18 = vmul.f32 %v6916_v62, %v6658_v57 }
 0x2a8   :  { %v2302_v1 = vpop.f32.mrf.mxu0  ;;  %v5467_v2 = vadd.f32 %v5466_v0, %v5465_v59  ;;  %v4639_v3 = vpop.f32.mrf.mxu1 }
 0x2a9   :  { %v4942_v5 = vmul.f32 %v4639_v3, %v2302_v1  ;;  %v5476_v24 = vsel %vm919_vm1, %v4944_v18, 0.0 }
 0x2aa   :  { %v6659_v6 = vpop.f32.mrf.mxu0  ;;  %v5469_v7 = vadd.f32 %v5468_v4, %v5467_v2  ;;  %v6917_v8 = vpop.f32.mrf.mxu1 }
 0x2ab   :  { %v5472_v13 = vsel %vm919_vm1, %v4942_v5, 0.0  ;;  %v4945_v19 = vmul.f32 %v6917_v8, %v6659_v6 }
 0x2ac   :  { %v2305_v10 = vpop.f32.mrf.mxu0  ;;  %v5471_v11 = vadd.f32 %v5470_v56, %v5469_v7  ;;  %v4642_v12 = vpop.f32.mrf.mxu1 }
 0x2ad   :  { %v4943_v14 = vmul.f32 %v4642_v12, %v2305_v10  ;;  %v5478_v29 = vsel %vm919_vm1, %v4945_v19, 0.0 }
 0x2ae   :  { %v6662_v15 = vpop.f32.mrf.mxu0  ;;  %v5473_v16 = vadd.f32 %v5472_v13, %v5471_v11  ;;  %v6920_v17 = vpop.f32.mrf.mxu1 }
 0x2af   :  { %v5474_v60 = vsel %vm919_vm1, %v4943_v14, 0.0  ;;  %v4948_v32 = vmul.f32 %v6920_v17, %v6662_v15 }
 0x2b0   :  { %v2318_v20 = vpop.f32.mrf.mxu0  ;;  %v5475_v22 = vadd.f32 %v5474_v60, %v5473_v16  ;;  %v4655_v23 = vpop.f32.mrf.mxu1 }
 0x2b1   :  { %v4946_v25 = vmul.f32 %v4655_v23, %v2318_v20  ;;  %v5484_v43 = vsel %vm919_vm1, %v4948_v32, 0.0 }
 0x2b2   :  { %v6663_v26 = vpop.f32.mrf.mxu0  ;;  %v5477_v27 = vadd.f32 %v5476_v24, %v5475_v22  ;;  %v6921_v28 = vpop.f32.mrf.mxu1 }
 0x2b3   :  { %v5480_v21 = vsel %vm919_vm1, %v4946_v25, 0.0  ;;  %v4949_v38 = vmul.f32 %v6921_v28, %v6663_v26 }
 0x2b4   :  { %v2321_v30 = vpop.f32.mrf.mxu0  ;;  %v5479_v31 = vadd.f32 %v5478_v29, %v5477_v27  ;;  %v4658_v9 = vpop.f32.mrf.mxu1  ;;  %v6151_v29 = vld [vmem:[%s8572_s4] ss:$0 sm:$0xff] }
 0x2b5   :  { %v4947_v33 = vmul.f32 %v4658_v9, %v2321_v30  ;;  %v5486_v48 = vsel %vm919_vm1, %v4949_v38, 0.0 }
 0x2b6   :  { %v6666_v35 = vpop.f32.mrf.mxu0  ;;  %v5481_v36 = vadd.f32 %v5480_v21, %v5479_v31  ;;  %v6924_v37 = vpop.f32.mrf.mxu1 }
 0x2b7   :  { %v5482_v39 = vsel %vm919_vm1, %v4947_v33, 0.0  ;;  %v4952_v51 = vmul.f32 %v6924_v37, %v6666_v35 }
 0x2b8   :  { %v2334_v40 = vpop.f32.mrf.mxu0  ;;  %v5483_v41 = vadd.f32 %v5482_v39, %v5481_v36  ;;  %v4671_v42 = vpop.f32.mrf.mxu1 }
 0x2b9   :  { %v4950_v44 = vmul.f32 %v4671_v42, %v2334_v40  ;;  %v5492_v1 = vsel %vm919_vm1, %v4952_v51, 0.0 }
 0x2ba   :  { %v6667_v45 = vpop.f32.mrf.mxu0  ;;  %v5485_v46 = vadd.f32 %v5484_v43, %v5483_v41  ;;  %v6925_v47 = vpop.f32.mrf.mxu1 }
 0x2bb   :  { %v5488_v52 = vsel %vm919_vm1, %v4950_v44, 0.0  ;;  %v4953_v57 = vmul.f32 %v6925_v47, %v6667_v45 }
 0x2bc   :  { %v2337_v49 = vpop.f32.mrf.mxu0  ;;  %v5487_v61 = vadd.f32 %v5486_v48, %v5485_v46  ;;  %v4674_v50 = vpop.f32.mrf.mxu1 }
 0x2bd   :  { %v4951_v53 = vmul.f32 %v4674_v50, %v2337_v49  ;;  %v5494_v6 = vsel %vm919_vm1, %v4953_v57, 0.0 }
 0x2be   :  { %v6670_v58 = vpop.f32.mrf.mxu0  ;;  %v5489_v54 = vadd.f32 %v5488_v52, %v5487_v61  ;;  %v6928_v55 = vpop.f32.mrf.mxu1 }
 0x2bf   :  { %v5490_v59 = vsel %vm919_vm1, %v4951_v53, 0.0  ;;  %v4956_v10 = vmul.f32 %v6928_v55, %v6670_v58 }
 0x2c0   :  { %v2350_v62 = vpop.f32.mrf.mxu0  ;;  %v5491_v63 = vadd.f32 %v5490_v59, %v5489_v54  ;;  %v4687_v0 = vpop.f32.mrf.mxu1 }
 0x2c1   :  { %v4954_v2 = vmul.f32 %v4687_v0, %v2350_v62  ;;  %v5500_v16 = vsel %vm919_vm1, %v4956_v10, 0.0 }
 0x2c2   :  { %v6671_v3 = vpop.f32.mrf.mxu0  ;;  %v5493_v4 = vadd.f32 %v5492_v1, %v5491_v63  ;;  %v6929_v5 = vpop.f32.mrf.mxu1 }
 0x2c3   :  { %v5496_v11 = vsel %vm919_vm1, %v4954_v2, 0.0  ;;  %v4957_v13 = vmul.f32 %v6929_v5, %v6671_v3 }
 0x2c4   :  { %v2353_v7 = vpop.f32.mrf.mxu0  ;;  %v5495_v8 = vadd.f32 %v5494_v6, %v5493_v4  ;;  %v4690_v56 = vpop.f32.mrf.mxu1 }
 0x2c5   :  { %v4955_v12 = vmul.f32 %v4690_v56, %v2353_v7  ;;  %v5502_v19 = vsel %vm919_vm1, %v4957_v13, 0.0 }
 0x2c6   :  { %v5497_v18 = vadd.f32 %v5496_v11, %v5495_v8 }
 0x2c7   :  { %v5498_v14 = vsel %vm919_vm1, %v4955_v12, 0.0 }
 0x2c8   :  { %v5499_v15 = vadd.f32 %v5498_v14, %v5497_v18 }
 0x2ca   :  { %v5501_v17 = vadd.f32 %v5500_v16, %v5499_v15 }
 0x2cc   :  { %v5503_v60 = vadd.f32 %v5502_v19, %v5501_v17 }
 0x2ce   :  { %v5504_v20 = vrot.slane %v5503_v60, 4 }
 0x2d0   :  { %v5505_v22 = vadd.f32 %v5504_v20, %v5503_v60 }
 0x2d2   :  { %v5506_v23 = vrot.slane %v5505_v22, 2 }
 0x2d4   :  { %v5507_v24 = vadd.f32 %v5506_v23, %v5505_v22 }
 0x2d6   :  { %v5508_v25 = vrot.slane %v5507_v24, 1 }
 0x2d8   :  { %v5509_v26 = vadd.f32 %v5508_v25, %v5507_v24 }
 0x2da   :  { %v5517_v27 = vmax.f32 %v5509_v26, 0.0 }
 0x2dc   :  { %v5547_v28 = vsel %vm5546_vm10, %v5517_v27, %v8534_v34 }
 0x2dd   :  { %6933 = vmatmul.mubr.msk.f32.vlgmr.msra.gmra.mxu0 %vm919_vm1, %v5547_v28 }
 0x39d   :  { %v5620_v30 = vpop.f32.mrf.mxu0 }
 0x39e   :  { %v5621_v31 = vadd.f32 %v6151_v29, %v5620_v30 }
 0x39f   :  { %v6934_v9 = vpop.f32.mrf.mxu0 }
 0x3a0   :  { %5624 = vst [vmem:[#allocation2] sm:$0xff] %v5621_v31 }
 0x3a1   :  { %7207 = shalt.err (!%p7204_p4)
}
 0x3a2   :  { %5634 = dma.vmem_to_hbm [thread:$0]  %s5632_s2, 128, %s8573_s5, [#allocation3]  }
 0x3a3   :  { %7216 = dma.done.wait [#allocation3], 128  }
 0x3a4   :  { %7217 = vsyncadd [#allocation3], 4294967168 }
 0x3a5   :  { %5638 = vsyncpa [#allocation3], 1 }

</bundles_post_ra>
